<compile_context>
chip_gen: v7x
topology: tpu7x:2x2x1
jax: 0.10.0
libtpu: 0.0.40
codegen_flags: <defaults>
</compile_context>

<pallas_src>
import jax
import jax.numpy as jnp
from jax.experimental import pallas as pl
from jax.experimental.pallas import tpu as pltpu

LANE = 128
SUBLANE = 8
NEG_INF = -1e30
ONES_BIAS = 30.0        # tanh(30) == 1.0 in f32: drives the folded-bias column


def _round_up(x, m):
    return ((x + m - 1) // m) * m


# ---------------------------------------------------------------------------
# Kernel: one decoder step, grid = (num_vocab_tiles,)
# ---------------------------------------------------------------------------
def luong_decoder_kernel(x_ref, h_ref, enc_ref, proj_e_ref,
                         w_gx_ref, w_gh_ref, b_gx_ref, b_gh_ref,
                         w_attn_h_ref, v_ref,
                         w_ch_ref, w_cc_ref, b_c_ref,
                         w_out_ref,
                         logits_ref, hnew_ref, m_ref, invl_ref,
                         cc_sc, m_sc, l_sc):
    j = pl.program_id(0)
    hp = h_ref.shape[1]

    # ---- vocab-tile-invariant prelude: GRU cell + attention + concat layer ----
    @pl.when(j == 0)
    def _():
        x = x_ref[...]                                      # (Bp, Hp) embedded token
        h_prev = h_ref[...]                                 # (Bp, Hp)

        # Two packed bf16 matmuls (no zero quadrants), columns [r | z | n]:
        gi = jnp.dot(x.astype(jnp.bfloat16), w_gx_ref[...],
                     preferred_element_type=jnp.float32) + b_gx_ref[...]
        gh = jnp.dot(h_prev.astype(jnp.bfloat16), w_gh_ref[...],
                     preferred_element_type=jnp.float32) + b_gh_ref[...]
        r = jax.nn.sigmoid(gi[:, 0:hp] + gh[:, 0:hp])
        z = jax.nn.sigmoid(gi[:, hp:2 * hp] + gh[:, hp:2 * hp])
        n = jnp.tanh(gi[:, 2 * hp:3 * hp] + r * gh[:, 2 * hp:3 * hp])
        h_new = (1.0 - z) * n + z * h_prev                  # (Bp, Hp)
        hnew_ref[...] = h_new

        # 'concat' attention.  proj_e (= enc @ W_e + b_attn) was precomputed
        # once per source sequence (bf16); only the hidden-side proj runs here.
        h_new_b = h_new.astype(jnp.bfloat16)
        proj_h = jnp.dot(h_new_b, w_attn_h_ref[...],
                         preferred_element_type=jnp.float32)          # (Bp, Hp)
        energy = jnp.tanh(proj_h[:, None, :]
                          + proj_e_ref[...].astype(jnp.float32))      # (Bp, S, Hp)
        scores = jnp.sum(energy * v_ref[...][None, :, :], axis=-1)    # (Bp, S)
        scores = scores - jnp.max(scores, axis=-1, keepdims=True)
        ew = jnp.exp(scores)
        attn_w = ew * pl.reciprocal(jnp.sum(ew, axis=-1, keepdims=True),
                                    approx=True)                      # (Bp, S)

        # context: VPU multiply + XLU reduce (avoids degenerate M=1 MXU matmuls)
        context = jnp.sum(attn_w[:, :, None] * enc_ref[...].astype(jnp.float32),
                          axis=1)                                     # (Bp, Hp)

        # concat Linear(2H->H)+tanh as two accumulated matmuls (no concat copy).
        # b_c's padded column H equals ONES_BIAS so cc[:, H] == 1.0, which turns
        # row H of w_out (holding b_out) into the output-layer bias.
        cc = jnp.tanh(
            jnp.dot(h_new_b, w_ch_ref[...], preferred_element_type=jnp.float32)
            + jnp.dot(context.astype(jnp.bfloat16), w_cc_ref[...],
                      preferred_element_type=jnp.float32)
            + b_c_ref[...])                                           # (Bp, Hc)
        cc_sc[...] = cc.astype(jnp.bfloat16)    # stored once in bf16 for the hot loop

        # init online-softmax state (finite NEG_INF: safe even for all-padded tiles)
        m_sc[...] = jnp.full_like(m_sc, NEG_INF)
        l_sc[...] = jnp.zeros_like(l_sc)

    # ---- per-vocab-tile output projection (3-deep-pipelined bf16 w_out stream) ----
    logits = jnp.dot(cc_sc[...], w_out_ref[...],
                     preferred_element_type=jnp.float32)              # (Bp, tn)
    logits_ref[...] = logits.astype(logits_ref.dtype)                 # bf16 writeback

    # online max / sum-exp across vocab tiles (padded cols carry -1e30 -> exp 0)
    m_prev = m_sc[...]
    m_new = jnp.maximum(m_prev, jnp.max(logits, axis=-1, keepdims=True))
    l_sc[...] = (l_sc[...] * jnp.exp(m_prev - m_new)
                 + jnp.sum(jnp.exp(logits - m_new), axis=-1, keepdims=True))
    m_sc[...] = m_new

    @pl.when(j == pl.num_programs(0) - 1)
    def _():
        m_ref[...] = m_sc[...]
        invl_ref[...] = pl.reciprocal(l_sc[...], approx=True)


# ---------------------------------------------------------------------------
# Parameter preparation (PyTorch layout -> padded / fused / bf16 kernel layout)
# ---------------------------------------------------------------------------
def init_params(key, vocab_size, hidden_size, output_size):
    """PyTorch-layout parameters (unpadded, float32)."""
    keys = jax.random.split(key, 12)
    k = 1.0 / jnp.sqrt(jnp.float32(hidden_size))

    def u(kk, shape):
        return jax.random.uniform(kk, shape, jnp.float32, -k, k)

    # row-normalized embedding (stand-in for embedding_matrix_normalized.npy)
    emb = jax.random.normal(keys[0], (vocab_size, hidden_size), jnp.float32)
    emb = emb / jnp.linalg.norm(emb, axis=1, keepdims=True)

    return dict(
        embedding=emb,
        w_ih=u(keys[1], (3 * hidden_size, hidden_size)),
        w_hh=u(keys[2], (3 * hidden_size, hidden_size)),
        b_ih=u(keys[3], (3 * hidden_size,)),
        b_hh=u(keys[4], (3 * hidden_size,)),
        w_attn=u(keys[5], (hidden_size, 2 * hidden_size)),   # Linear(2H->H).weight
        b_attn=u(keys[6], (hidden_size,)),
        v_attn=u(keys[7], (hidden_size,)),
        w_concat=u(keys[8], (hidden_size, 2 * hidden_size)),
        b_concat=u(keys[9], (hidden_size,)),
        w_out=u(keys[10], (output_size, hidden_size)),
        b_out=u(keys[11], (output_size,)),
    )


def prepare_kernel_params(p, tn=512):
    """Pad H,V to lane multiples, pack the GRU halves without zero quadrants,
    fold b_out into an extra row of w_out, cast matmul weights to bf16."""
    H = p['w_attn'].shape[0]
    V = p['w_out'].shape[0]
    Hp = _round_up(H, LANE)
    Hc = _round_up(H + 1, LANE)   # concat-output dim; row H of w_out carries b_out
    Vp = _round_up(V, tn)
    f32, bf16 = jnp.float32, jnp.bfloat16

    w_ih_t, w_hh_t = p['w_ih'].T, p['w_hh'].T              # (H, 3H), cols [r|z|n]

    def pack3(wt):
        w = jnp.zeros((Hp, 3 * Hp), f32)
        w = w.at[0:H, 0:H].set(wt[:, 0:H])
        w = w.at[0:H, Hp:Hp + H].set(wt[:, H:2 * H])
        w = w.at[0:H, 2 * Hp:2 * Hp + H].set(wt[:, 2 * H:3 * H])
        return w

    def pack3b(b):
        bb = jnp.zeros((1, 3 * Hp), f32)
        bb = bb.at[0, 0:H].set(b[0:H])
        bb = bb.at[0, Hp:Hp + H].set(b[H:2 * H])
        bb = bb.at[0, 2 * Hp:2 * Hp + H].set(b[2 * H:3 * H])
        return bb

    # 'concat' attention Linear(2H->H) split into hidden-half / encoder-half
    w_attn_h = jnp.zeros((Hp, Hp), f32).at[0:H, 0:H].set(p['w_attn'][:, 0:H].T)
    w_attn_e = jnp.zeros((Hp, Hp), f32).at[0:H, 0:H].set(p['w_attn'][:, H:2 * H].T)
    b_attn = jnp.zeros((1, Hp), f32).at[0, 0:H].set(p['b_attn'])
    v_attn = jnp.zeros((1, Hp), f32).at[0, 0:H].set(p['v_attn'])

    # concat layer split into h-half / context-half; padded column H is driven
    # to tanh(ONES_BIAS) = 1.0 so the output bias can live in w_out row H.
    w_concat_h = jnp.zeros((Hp, Hc), f32).at[0:H, 0:H].set(p['w_concat'][:, 0:H].T)
    w_concat_c = jnp.zeros((Hp, Hc), f32).at[0:H, 0:H].set(p['w_concat'][:, H:2 * H].T)
    b_concat = (jnp.zeros((1, Hc), f32)
                .at[0, 0:H].set(p['b_concat'])
                .at[0, H].set(ONES_BIAS))

    # output projection with folded bias; padded vocab columns get -1e30 so
    # their softmax contribution is exactly 0.
    w_out = jnp.zeros((Hc, Vp), f32)
    w_out = w_out.at[0:H, 0:V].set(p['w_out'].T)
    w_out = w_out.at[H, 0:V].set(p['b_out'])
    w_out = w_out.at[H, V:Vp].set(NEG_INF)

    return dict(
        H=H, V=V, Hp=Hp, Hc=Hc, Vp=Vp, tn=tn,
        embedding=p['embedding'],
        w_gx=pack3(w_ih_t).astype(bf16), w_gh=pack3(w_hh_t).astype(bf16),
        b_gx=pack3b(p['b_ih']), b_gh=pack3b(p['b_hh']),
        w_attn_h=w_attn_h.astype(bf16), w_attn_e=w_attn_e, b_attn=b_attn,
        v_attn=v_attn,
        w_concat_h=w_concat_h.astype(bf16), w_concat_c=w_concat_c.astype(bf16),
        b_concat=b_concat,
        w_out=w_out.astype(bf16),
    )


def precompute_encoder(kp, encoder_outputs):
    """ONCE per source sequence (not per decoded token): batch-first transpose,
    TPU-friendly padding and the step-invariant encoder half of the 'concat'
    attention projection.  Both (Bp,S,Hp) tensors are stored in bf16 to halve
    their per-step DMA bytes / VMEM footprint."""
    S, B, H = encoder_outputs.shape
    Hp = kp['Hp']
    Bp = _round_up(B, SUBLANE)
    enc = jnp.transpose(encoder_outputs, (1, 0, 2)).astype(jnp.float32)    # (B,S,H)
    enc_p = jnp.zeros((Bp, S, Hp), jnp.float32).at[:B, :, :H].set(enc)
    proj_e = jnp.einsum('bsh,hk->bsk', enc_p, kp['w_attn_e'],
                        preferred_element_type=jnp.float32) + kp['b_attn']
    return enc_p.astype(jnp.bfloat16), proj_e.astype(jnp.bfloat16)


# ---------------------------------------------------------------------------
# Wrapper: one decoder step
# ---------------------------------------------------------------------------
def luong_attn_decoder_step(kp, input_step, last_hidden, enc_p, proj_e):
    """Mirrors LuongAttnDecoderRNN.forward for one token.

    input_step : (1, B) int32 ; last_hidden : (1, B, H) f32 ;
    enc_p / proj_e : outputs of precompute_encoder (padded, batch-first, bf16).
    Returns (output (B, V) softmax probs, hidden (1, B, H)).
    """
    H, V, Hp, Hc, Vp, tn = kp['H'], kp['V'], kp['Hp'], kp['Hc'], kp['Vp'], kp['tn']
    B = input_step.shape[1]
    Bp, S = enc_p.shape[0], enc_p.shape[1]
    num_tiles = Vp // tn

    # Embedding lookup stays as plain-JAX glue (gather).
    # TODO(synk): training-mode embedding dropout not modeled (inference / p=0).
    emb = kp['embedding'][input_step[0]].astype(jnp.float32)      # (B, H)
    h_prev = last_hidden[0].astype(jnp.float32)                   # (B, H)

    x_p = jnp.zeros((Bp, Hp), jnp.float32).at[:B, :H].set(emb)
    h_p = jnp.zeros((Bp, Hp), jnp.float32).at[:B, :H].set(h_prev)

    def _call(use_buffered):
        def _spec(shape, index_map, buffers=None):
            if buffers is not None and use_buffered and hasattr(pl, "Buffered"):
                try:
                    return pl.BlockSpec(shape, index_map,
                                        pipeline_mode=pl.Buffered(buffers))
                except TypeError:
                    pass
            return pl.BlockSpec(shape, index_map)

        def _resident(shape):
            nd = len(shape)
            # constant index map -> block lives in VMEM; Buffered(1) avoids a
            # useless second copy of every step-invariant operand.
            return _spec(shape, lambda j, _nd=nd: (0,) * _nd, buffers=1)

        grid_spec = pltpu.PrefetchScalarGridSpec(
            num_scalar_prefetch=0,
            grid=(num_tiles,),
            in_specs=[
                _resident((Bp, Hp)),                     # x (embedded token)
                _resident((Bp, Hp)),                     # h_prev
                _resident((Bp, S, Hp)),                  # enc (bf16)
                _resident((Bp, S, Hp)),                  # proj_e (bf16, precomputed)
                _resident((Hp, 3 * Hp)),                 # GRU x-weights (bf16)
                _resident((Hp, 3 * Hp)),                 # GRU h-weights (bf16)
                _resident((1, 3 * Hp)),                  # GRU x-bias
                _resident((1, 3 * Hp)),                  # GRU h-bias
                _resident((Hp, Hp)),                     # attn hidden-half weight (bf16)
                _resident((1, Hp)),                      # attn v
                _resident((Hp, Hc)),                     # concat weight, h half (bf16)
                _resident((Hp, Hc)),                     # concat weight, ctx half (bf16)
                _resident((1, Hc)),                      # concat bias (+ ones-column)
                _spec((Hc, tn), lambda j: (0, j), buffers=3),  # streamed w_out tile
            ],
            out_specs=(
                pl.BlockSpec((Bp, tn), lambda j: (0, j)),   # logits tiles (bf16)
                pl.BlockSpec((Bp, Hp), lambda j: (0, 0)),   # h_new (resident)
                pl.BlockSpec((Bp, 1), lambda j: (0, 0)),    # running row max
                pl.BlockSpec((Bp, 1), lambda j: (0, 0)),    # 1 / sum(exp)
            ),
            scratch_shapes=[
                pltpu.VMEM((Bp, Hc), jnp.bfloat16),      # cc (stored once, bf16)
                pltpu.VMEM((Bp, 1), jnp.float32),        # online max
                pltpu.VMEM((Bp, 1), jnp.float32),        # online sum-exp
            ],
        )
        return pl.pallas_call(
            luong_decoder_kernel,
            grid_spec=grid_spec,
            out_shape=(jax.ShapeDtypeStruct((Bp, Vp), jnp.bfloat16),
                       jax.ShapeDtypeStruct((Bp, Hp), jnp.float32),
                       jax.ShapeDtypeStruct((Bp, 1), jnp.float32),
                       jax.ShapeDtypeStruct((Bp, 1), jnp.float32)),
            compiler_params=pltpu.CompilerParams(
                dimension_semantics=("arbitrary",),      # online-softmax carry over V tiles
                vmem_limit_bytes=64 * 1024 * 1024),
        )(x_p, h_p, enc_p, proj_e,
          kp['w_gx'], kp['w_gh'], kp['b_gx'], kp['b_gh'],
          kp['w_attn_h'], kp['v_attn'],
          kp['w_concat_h'], kp['w_concat_c'], kp['b_concat'],
          kp['w_out'])

    try:
        logits_p, hnew_p, m_p, invl_p = _call(use_buffered=True)
    except Exception:
        # pipeline_mode / Buffered not supported by this build -> default buffering
        logits_p, hnew_p, m_p, invl_p = _call(use_buffered=False)

    # softmax finalize: single elementwise pass (max and 1/sum came from the kernel)
    probs = jnp.exp(logits_p.astype(jnp.float32) - m_p) * invl_p       # (Bp, Vp)
    output = probs[:B, :V]
    h_new = hnew_p[:B, :H]
    return output, h_new[None, :, :]


# ---------------------------------------------------------------------------
# Pure-JAX reference (PyTorch semantics) for a correctness check
# ---------------------------------------------------------------------------
def reference_step(p, input_step, last_hidden, encoder_outputs):
    emb = p['embedding'][input_step[0]].astype(jnp.float32)        # (B, H)
    h = last_hidden[0]
    H = h.shape[1]
    gi = emb @ p['w_ih'].T + p['b_ih']
    gh = h @ p['w_hh'].T + p['b_hh']
    r = jax.nn.sigmoid(gi[:, :H] + gh[:, :H])
    z = jax.nn.sigmoid(gi[:, H:2 * H] + gh[:, H:2 * H])
    n = jnp.tanh(gi[:, 2 * H:] + r * gh[:, 2 * H:])
    h_new = (1.0 - z) * n + z * h

    enc = jnp.transpose(encoder_outputs, (1, 0, 2))                # (B, S, H)
    cat = jnp.concatenate(
        [jnp.broadcast_to(h_new[:, None, :], enc.shape), enc], axis=-1)
    energy = jnp.tanh(cat @ p['w_attn'].T + p['b_attn'])
    scores = jnp.sum(p['v_attn'] * energy, axis=-1)                # (B, S)
    attn_w = jax.nn.softmax(scores, axis=-1)
    context = jnp.einsum('bs,bsh->bh', attn_w, enc)
    cc = jnp.tanh(jnp.concatenate([h_new, context], axis=-1) @ p['w_concat'].T
                  + p['b_concat'])
    logits = cc @ p['w_out'].T + p['b_out']
    return jax.nn.softmax(logits, axis=1), h_new[None, :, :]


if __name__ == "__main__":
    B, H, S, V = 2, 32, 8, 300   # batch, hidden, src seq len, output vocab size

    key = jax.random.PRNGKey(0)
    kparam, ktok, khid, kenc = jax.random.split(key, 4)

    params = init_params(kparam, vocab_size=V, hidden_size=H, output_size=V)
    # tn=128 only because V=300 is tiny (gives 3 streamed tiles for this smoke
    # test); use the default tn=512 (sweep 512-1024) at realistic vocab sizes.
    kparams = prepare_kernel_params(params, tn=128)

    input_step = jax.random.randint(ktok, (1, B), 0, V, dtype=jnp.int32)    # (1, B)
    last_hidden = jax.random.normal(khid, (1, B, H), jnp.float32)           # (1, B, H)
    encoder_outputs = jax.random.normal(kenc, (S, B, H), jnp.float32)       # (S, B, H)

    # once per source sequence (hoisted out of the per-token path)
    enc_p, proj_e = precompute_encoder(kparams, encoder_outputs)

    output, hidden = luong_attn_decoder_step(kparams, input_step, last_hidden,
                                             enc_p, proj_e)
    jax.block_until_ready((output, hidden))

    ref_out, ref_hidden = reference_step(params, input_step, last_hidden,
                                         encoder_outputs)

    assert output.shape == (B, V) and hidden.shape == (1, B, H)
    assert bool(jnp.all(jnp.isfinite(output))) and bool(jnp.all(jnp.isfinite(hidden)))
    # bf16 logits round-trip + approx reciprocal -> normalization accurate to ~1%.
    assert bool(jnp.allclose(jnp.sum(output, axis=1), 1.0, atol=1e-2))
    assert bool(jnp.allclose(output, ref_out, atol=3e-2))
    assert bool(jnp.allclose(hidden, ref_hidden, atol=3e-2))
    print("KERNEL_OK")
</pallas_src>

<mosaic_0001>
module attributes {stable_mosaic.version = 11 : i64} {
  func.func @luong_decoder_kernel(%arg0: i32, %arg1: memref<8x128xf32, #tpu.memory_space<vmem>>, %arg2: memref<8x128xf32, #tpu.memory_space<vmem>>, %arg3: memref<8x8x128xbf16, #tpu.memory_space<vmem>>, %arg4: memref<8x8x128xbf16, #tpu.memory_space<vmem>>, %arg5: memref<128x384xbf16, #tpu.memory_space<vmem>>, %arg6: memref<128x384xbf16, #tpu.memory_space<vmem>>, %arg7: memref<1x384xf32, #tpu.memory_space<vmem>>, %arg8: memref<1x384xf32, #tpu.memory_space<vmem>>, %arg9: memref<128x128xbf16, #tpu.memory_space<vmem>>, %arg10: memref<1x128xf32, #tpu.memory_space<vmem>>, %arg11: memref<128x128xbf16, #tpu.memory_space<vmem>>, %arg12: memref<128x128xbf16, #tpu.memory_space<vmem>>, %arg13: memref<1x128xf32, #tpu.memory_space<vmem>>, %arg14: memref<128x128xbf16, #tpu.memory_space<vmem>>, %arg15: memref<8x128xbf16, #tpu.memory_space<vmem>>, %arg16: memref<8x128xf32, #tpu.memory_space<vmem>>, %arg17: memref<8x1xf32, #tpu.memory_space<vmem>>, %arg18: memref<8x1xf32, #tpu.memory_space<vmem>>, %arg19: memref<8x128xbf16, #tpu.memory_space<vmem>>, %arg20: memref<8x1xf32, #tpu.memory_space<vmem>>, %arg21: memref<8x1xf32, #tpu.memory_space<vmem>>) attributes {dimension_semantics = [#tpu.dimension_semantics<arbitrary>], iteration_bounds = array<i64: 3>, scalar_prefetch = 0 : i64, scratch_operands = 3 : i64, tpu.core_type = #tpu.core_type<tc>, window_params = [{pipeline_mode = #tpu.pipeline_mode<synchronous>, transform_indices = @transform_0, window_bounds = array<i64: 8, 128>}, {pipeline_mode = #tpu.pipeline_mode<synchronous>, transform_indices = @transform_1, window_bounds = array<i64: 8, 128>}, {pipeline_mode = #tpu.pipeline_mode<synchronous>, transform_indices = @transform_2, window_bounds = array<i64: 8, 8, 128>}, {pipeline_mode = #tpu.pipeline_mode<synchronous>, transform_indices = @transform_3, window_bounds = array<i64: 8, 8, 128>}, {pipeline_mode = #tpu.pipeline_mode<synchronous>, transform_indices = @transform_4, window_bounds = array<i64: 128, 384>}, {pipeline_mode = #tpu.pipeline_mode<synchronous>, transform_indices = @transform_5, window_bounds = array<i64: 128, 384>}, {pipeline_mode = #tpu.pipeline_mode<synchronous>, transform_indices = @transform_6, window_bounds = array<i64: 1, 384>}, {pipeline_mode = #tpu.pipeline_mode<synchronous>, transform_indices = @transform_7, window_bounds = array<i64: 1, 384>}, {pipeline_mode = #tpu.pipeline_mode<synchronous>, transform_indices = @transform_8, window_bounds = array<i64: 128, 128>}, {pipeline_mode = #tpu.pipeline_mode<synchronous>, transform_indices = @transform_9, window_bounds = array<i64: 1, 128>}, {pipeline_mode = #tpu.pipeline_mode<synchronous>, transform_indices = @transform_10, window_bounds = array<i64: 128, 128>}, {pipeline_mode = #tpu.pipeline_mode<synchronous>, transform_indices = @transform_11, window_bounds = array<i64: 128, 128>}, {pipeline_mode = #tpu.pipeline_mode<synchronous>, transform_indices = @transform_12, window_bounds = array<i64: 1, 128>}, {transform_indices = @transform_13, window_bounds = array<i64: 128, 128>}, {transform_indices = @transform_14, window_bounds = array<i64: 8, 128>}, {pipeline_mode = #tpu.pipeline_mode<synchronous>, transform_indices = @transform_15, window_bounds = array<i64: 8, 128>}, {pipeline_mode = #tpu.pipeline_mode<synchronous>, transform_indices = @transform_16, window_bounds = array<i64: 8, 1>}, {pipeline_mode = #tpu.pipeline_mode<synchronous>, transform_indices = @transform_17, window_bounds = array<i64: 8, 1>}]} {
    %c0_i32 = arith.constant 0 : i32
    %0 = arith.cmpi eq, %arg0, %c0_i32 : i32
    %1 = arith.extui %0 : i1 to i32
    %c0_i32_0 = arith.constant 0 : i32
    %2 = arith.cmpi ne, %1, %c0_i32_0 : i32
    scf.if %2 {
      %c0_17 = arith.constant 0 : index
      %c0_18 = arith.constant 0 : index
      %27 = vector.load %arg1[%c0_17, %c0_18] : memref<8x128xf32, #tpu.memory_space<vmem>>, vector<8x128xf32>
      %c0_19 = arith.constant 0 : index
      %c0_20 = arith.constant 0 : index
      %28 = vector.load %arg2[%c0_19, %c0_20] : memref<8x128xf32, #tpu.memory_space<vmem>>, vector<8x128xf32>
      %29 = arith.truncf %27 : vector<8x128xf32> to vector<8x128xbf16>
      %c0_21 = arith.constant 0 : index
      %c0_22 = arith.constant 0 : index
      %30 = vector.load %arg5[%c0_21, %c0_22] : memref<128x384xbf16, #tpu.memory_space<vmem>>, vector<128x384xbf16>
      %cst_23 = arith.constant dense<0.000000e+00> : vector<8x384xf32>
      %31 = tpu.matmul %29, %30, %cst_23 {dimension_numbers = #tpu.dot_dimension_numbers<[1], [0], [0], [1], [0, 0, 1, 1], [], []>} : vector<8x128xbf16>, vector<128x384xbf16>, vector<8x384xf32> -> vector<8x384xf32>
      %c0_24 = arith.constant 0 : index
      %c0_25 = arith.constant 0 : index
      %32 = vector.load %arg7[%c0_24, %c0_25] : memref<1x384xf32, #tpu.memory_space<vmem>>, vector<1x384xf32>
      %33 = vector.broadcast %32 : vector<1x384xf32> to vector<8x384xf32>
      %34 = arith.addf %31, %33 : vector<8x384xf32>
      %35 = arith.truncf %28 : vector<8x128xf32> to vector<8x128xbf16>
      %c0_26 = arith.constant 0 : index
      %c0_27 = arith.constant 0 : index
      %36 = vector.load %arg6[%c0_26, %c0_27] : memref<128x384xbf16, #tpu.memory_space<vmem>>, vector<128x384xbf16>
      %cst_28 = arith.constant dense<0.000000e+00> : vector<8x384xf32>
      %37 = tpu.matmul %35, %36, %cst_28 {dimension_numbers = #tpu.dot_dimension_numbers<[1], [0], [0], [1], [0, 0, 1, 1], [], []>} : vector<8x128xbf16>, vector<128x384xbf16>, vector<8x384xf32> -> vector<8x384xf32>
      %c0_29 = arith.constant 0 : index
      %c0_30 = arith.constant 0 : index
      %38 = vector.load %arg8[%c0_29, %c0_30] : memref<1x384xf32, #tpu.memory_space<vmem>>, vector<1x384xf32>
      %39 = vector.broadcast %38 : vector<1x384xf32> to vector<8x384xf32>
      %40 = arith.addf %37, %39 : vector<8x384xf32>
      %41 = vector.extract_strided_slice %34 {offsets = [0, 0], sizes = [8, 128], strides = [1, 1]} : vector<8x384xf32> to vector<8x128xf32>
      %42 = vector.extract_strided_slice %40 {offsets = [0, 0], sizes = [8, 128], strides = [1, 1]} : vector<8x384xf32> to vector<8x128xf32>
      %43 = arith.addf %41, %42 : vector<8x128xf32>
      %44 = arith.negf %43 : vector<8x128xf32>
      %45 = math.exp %44 : vector<8x128xf32>
      %cst_31 = arith.constant 1.000000e+00 : f32
      %46 = vector.broadcast %cst_31 : f32 to vector<8x128xf32>
      %47 = arith.addf %46, %45 : vector<8x128xf32>
      %48 = arith.divf %46, %47 : vector<8x128xf32>
      %49 = vector.extract_strided_slice %34 {offsets = [0, 128], sizes = [8, 128], strides = [1, 1]} : vector<8x384xf32> to vector<8x128xf32>
      %50 = vector.extract_strided_slice %40 {offsets = [0, 128], sizes = [8, 128], strides = [1, 1]} : vector<8x384xf32> to vector<8x128xf32>
      %51 = arith.addf %49, %50 : vector<8x128xf32>
      %52 = arith.negf %51 : vector<8x128xf32>
      %53 = math.exp %52 : vector<8x128xf32>
      %cst_32 = arith.constant 1.000000e+00 : f32
      %54 = vector.broadcast %cst_32 : f32 to vector<8x128xf32>
      %55 = arith.addf %54, %53 : vector<8x128xf32>
      %56 = arith.divf %54, %55 : vector<8x128xf32>
      %57 = vector.extract_strided_slice %34 {offsets = [0, 256], sizes = [8, 128], strides = [1, 1]} : vector<8x384xf32> to vector<8x128xf32>
      %58 = vector.extract_strided_slice %40 {offsets = [0, 256], sizes = [8, 128], strides = [1, 1]} : vector<8x384xf32> to vector<8x128xf32>
      %59 = arith.mulf %48, %58 : vector<8x128xf32>
      %60 = arith.addf %57, %59 : vector<8x128xf32>
      %61 = math.tanh %60 : vector<8x128xf32>
      %cst_33 = arith.constant 1.000000e+00 : f32
      %62 = vector.broadcast %cst_33 : f32 to vector<8x128xf32>
      %63 = arith.subf %62, %56 : vector<8x128xf32>
      %64 = arith.mulf %63, %61 : vector<8x128xf32>
      %65 = arith.mulf %56, %28 : vector<8x128xf32>
      %66 = arith.addf %64, %65 : vector<8x128xf32>
      %c0_34 = arith.constant 0 : index
      %c0_35 = arith.constant 0 : index
      %67 = vector.load %arg16[%c0_34, %c0_35] : memref<8x128xf32, #tpu.memory_space<vmem>>, vector<8x128xf32>
      tpu.vector_store %arg16[%c0_34, %c0_35], %66 {strides = array<i32>} : memref<8x128xf32, #tpu.memory_space<vmem>>, vector<8x128xf32>,
      %68 = arith.truncf %66 : vector<8x128xf32> to vector<8x128xbf16>
      %c0_36 = arith.constant 0 : index
      %c0_37 = arith.constant 0 : index
      %69 = vector.load %arg9[%c0_36, %c0_37] : memref<128x128xbf16, #tpu.memory_space<vmem>>, vector<128x128xbf16>
      %cst_38 = arith.constant dense<0.000000e+00> : vector<8x128xf32>
      %70 = tpu.matmul %68, %69, %cst_38 {dimension_numbers = #tpu.dot_dimension_numbers<[1], [0], [0], [1], [0, 0, 1, 1], [], []>} : vector<8x128xbf16>, vector<128x128xbf16>, vector<8x128xf32> -> vector<8x128xf32>
      %71 = vector.shape_cast %70 : vector<8x128xf32> to vector<8x1x128xf32>
      %c0_39 = arith.constant 0 : index
      %c0_40 = arith.constant 0 : index
      %c0_41 = arith.constant 0 : index
      %72 = vector.load %arg4[%c0_39, %c0_40, %c0_41] : memref<8x8x128xbf16, #tpu.memory_space<vmem>>, vector<8x8x128xbf16>
      %73 = arith.extf %72 : vector<8x8x128xbf16> to vector<8x8x128xf32>
      %74 = vector.broadcast %71 : vector<8x1x128xf32> to vector<8x8x128xf32>
      %75 = arith.addf %74, %73 : vector<8x8x128xf32>
      %76 = math.tanh %75 : vector<8x8x128xf32>
      %c0_42 = arith.constant 0 : index
      %c0_43 = arith.constant 0 : index
      %77 = vector.load %arg10[%c0_42, %c0_43] : memref<1x128xf32, #tpu.memory_space<vmem>>, vector<1x128xf32>
      %78 = vector.shape_cast %77 : vector<1x128xf32> to vector<1x1x128xf32>
      %79 = vector.broadcast %78 : vector<1x1x128xf32> to vector<8x8x128xf32>
      %80 = arith.mulf %76, %79 : vector<8x8x128xf32>
      %cst_44 = arith.constant dense<0.000000e+00> : vector<8x8xf32>
      %81 = vector.multi_reduction <add>, %80, %cst_44 [2] : vector<8x8x128xf32> to vector<8x8xf32>
      %cst_45 = arith.constant dense<0xFF800000> : vector<8xf32>
      %82 = vector.multi_reduction <maximumf>, %81, %cst_45 [1] : vector<8x8xf32> to vector<8xf32>
      %83 = vector.shape_cast %82 : vector<8xf32> to vector<8x1xf32>
      %84 = vector.broadcast %83 : vector<8x1xf32> to vector<8x8xf32>
      %85 = arith.subf %81, %84 : vector<8x8xf32>
      %86 = math.exp %85 : vector<8x8xf32>
      %cst_46 = arith.constant dense<0.000000e+00> : vector<8xf32>
      %87 = vector.multi_reduction <add>, %86, %cst_46 [1] : vector<8x8xf32> to vector<8xf32>
      %88 = vector.shape_cast %87 : vector<8xf32> to vector<8x1xf32>
      %89 = tpu.reciprocal %88 {approx = true} : vector<8x1xf32> -> vector<8x1xf32>
      %90 = vector.broadcast %89 : vector<8x1xf32> to vector<8x8xf32>
      %91 = arith.mulf %86, %90 : vector<8x8xf32>
      %92 = vector.shape_cast %91 : vector<8x8xf32> to vector<8x8x1xf32>
      %c0_47 = arith.constant 0 : index
      %c0_48 = arith.constant 0 : index
      %c0_49 = arith.constant 0 : index
      %93 = vector.load %arg3[%c0_47, %c0_48, %c0_49] : memref<8x8x128xbf16, #tpu.memory_space<vmem>>, vector<8x8x128xbf16>
      %94 = arith.extf %93 : vector<8x8x128xbf16> to vector<8x8x128xf32>
      %95 = vector.broadcast %92 : vector<8x8x1xf32> to vector<8x8x128xf32>
      %96 = arith.mulf %95, %94 : vector<8x8x128xf32>
      %cst_50 = arith.constant dense<0.000000e+00> : vector<8x128xf32>
      %97 = vector.multi_reduction <add>, %96, %cst_50 [1] : vector<8x8x128xf32> to vector<8x128xf32>
      %c0_51 = arith.constant 0 : index
      %c0_52 = arith.constant 0 : index
      %98 = vector.load %arg11[%c0_51, %c0_52] : memref<128x128xbf16, #tpu.memory_space<vmem>>, vector<128x128xbf16>
      %cst_53 = arith.constant dense<0.000000e+00> : vector<8x128xf32>
      %99 = tpu.matmul %68, %98, %cst_53 {dimension_numbers = #tpu.dot_dimension_numbers<[1], [0], [0], [1], [0, 0, 1, 1], [], []>} : vector<8x128xbf16>, vector<128x128xbf16>, vector<8x128xf32> -> vector<8x128xf32>
      %100 = arith.truncf %97 : vector<8x128xf32> to vector<8x128xbf16>
      %c0_54 = arith.constant 0 : index
      %c0_55 = arith.constant 0 : index
      %101 = vector.load %arg12[%c0_54, %c0_55] : memref<128x128xbf16, #tpu.memory_space<vmem>>, vector<128x128xbf16>
      %cst_56 = arith.constant dense<0.000000e+00> : vector<8x128xf32>
      %102 = tpu.matmul %100, %101, %cst_56 {dimension_numbers = #tpu.dot_dimension_numbers<[1], [0], [0], [1], [0, 0, 1, 1], [], []>} : vector<8x128xbf16>, vector<128x128xbf16>, vector<8x128xf32> -> vector<8x128xf32>
      %103 = arith.addf %99, %102 : vector<8x128xf32>
      %c0_57 = arith.constant 0 : index
      %c0_58 = arith.constant 0 : index
      %104 = vector.load %arg13[%c0_57, %c0_58] : memref<1x128xf32, #tpu.memory_space<vmem>>, vector<1x128xf32>
      %105 = vector.broadcast %104 : vector<1x128xf32> to vector<8x128xf32>
      %106 = arith.addf %103, %105 : vector<8x128xf32>
      %107 = math.tanh %106 : vector<8x128xf32>
      %108 = arith.truncf %107 : vector<8x128xf32> to vector<8x128xbf16>
      %c0_59 = arith.constant 0 : index
      %c0_60 = arith.constant 0 : index
      %109 = vector.load %arg19[%c0_59, %c0_60] : memref<8x128xbf16, #tpu.memory_space<vmem>>, vector<8x128xbf16>
      tpu.vector_store %arg19[%c0_59, %c0_60], %108 {strides = array<i32>} : memref<8x128xbf16, #tpu.memory_space<vmem>>, vector<8x128xbf16>,
      %cst_61 = arith.constant -1.000000e+30 : f32
      %110 = vector.broadcast %cst_61 : f32 to vector<8x1xf32>
      %c0_62 = arith.constant 0 : index
      %c0_63 = arith.constant 0 : index
      %111 = vector.load %arg20[%c0_62, %c0_63] : memref<8x1xf32, #tpu.memory_space<vmem>>, vector<8x1xf32>
      tpu.vector_store %arg20[%c0_62, %c0_63], %110 {strides = array<i32>} : memref<8x1xf32, #tpu.memory_space<vmem>>, vector<8x1xf32>,
      %cst_64 = arith.constant 0.000000e+00 : f32
      %112 = vector.broadcast %cst_64 : f32 to vector<8x1xf32>
      %c0_65 = arith.constant 0 : index
      %c0_66 = arith.constant 0 : index
      %113 = vector.load %arg21[%c0_65, %c0_66] : memref<8x1xf32, #tpu.memory_space<vmem>>, vector<8x1xf32>
      tpu.vector_store %arg21[%c0_65, %c0_66], %112 {strides = array<i32>} : memref<8x1xf32, #tpu.memory_space<vmem>>, vector<8x1xf32>,
    } else {
    }
    %c0 = arith.constant 0 : index
    %c0_1 = arith.constant 0 : index
    %3 = vector.load %arg19[%c0, %c0_1] : memref<8x128xbf16, #tpu.memory_space<vmem>>, vector<8x128xbf16>
    %c0_2 = arith.constant 0 : index
    %c0_3 = arith.constant 0 : index
    %4 = vector.load %arg14[%c0_2, %c0_3] : memref<128x128xbf16, #tpu.memory_space<vmem>>, vector<128x128xbf16>
    %cst = arith.constant dense<0.000000e+00> : vector<8x128xf32>
    %5 = tpu.matmul %3, %4, %cst {dimension_numbers = #tpu.dot_dimension_numbers<[1], [0], [0], [1], [0, 0, 1, 1], [], []>} : vector<8x128xbf16>, vector<128x128xbf16>, vector<8x128xf32> -> vector<8x128xf32>
    %6 = arith.truncf %5 : vector<8x128xf32> to vector<8x128xbf16>
    %c0_4 = arith.constant 0 : index
    %c0_5 = arith.constant 0 : index
    %7 = vector.load %arg15[%c0_4, %c0_5] : memref<8x128xbf16, #tpu.memory_space<vmem>>, vector<8x128xbf16>
    tpu.vector_store %arg15[%c0_4, %c0_5], %6 {strides = array<i32>} : memref<8x128xbf16, #tpu.memory_space<vmem>>, vector<8x128xbf16>,
    %c0_6 = arith.constant 0 : index
    %c0_7 = arith.constant 0 : index
    %8 = vector.load %arg20[%c0_6, %c0_7] : memref<8x1xf32, #tpu.memory_space<vmem>>, vector<8x1xf32>
    %cst_8 = arith.constant dense<0xFF800000> : vector<8xf32>
    %9 = vector.multi_reduction <maximumf>, %5, %cst_8 [1] : vector<8x128xf32> to vector<8xf32>
    %10 = vector.shape_cast %9 : vector<8xf32> to vector<8x1xf32>
    %11 = arith.maximumf %8, %10 : vector<8x1xf32>
    %c0_9 = arith.constant 0 : index
    %c0_10 = arith.constant 0 : index
    %12 = vector.load %arg21[%c0_9, %c0_10] : memref<8x1xf32, #tpu.memory_space<vmem>>, vector<8x1xf32>
    %13 = arith.subf %8, %11 : vector<8x1xf32>
    %14 = math.exp %13 : vector<8x1xf32>
    %15 = arith.mulf %12, %14 : vector<8x1xf32>
    %16 = vector.broadcast %11 : vector<8x1xf32> to vector<8x128xf32>
    %17 = arith.subf %5, %16 : vector<8x128xf32>
    %18 = math.exp %17 : vector<8x128xf32>
    %cst_11 = arith.constant dense<0.000000e+00> : vector<8xf32>
    %19 = vector.multi_reduction <add>, %18, %cst_11 [1] : vector<8x128xf32> to vector<8xf32>
    %20 = vector.shape_cast %19 : vector<8xf32> to vector<8x1xf32>
    %21 = arith.addf %15, %20 : vector<8x1xf32>
    %c0_12 = arith.constant 0 : index
    %c0_13 = arith.constant 0 : index
    %22 = vector.load %arg21[%c0_12, %c0_13] : memref<8x1xf32, #tpu.memory_space<vmem>>, vector<8x1xf32>
    tpu.vector_store %arg21[%c0_12, %c0_13], %21 {strides = array<i32>} : memref<8x1xf32, #tpu.memory_space<vmem>>, vector<8x1xf32>,
    %c0_14 = arith.constant 0 : index
    %c0_15 = arith.constant 0 : index
    %23 = vector.load %arg20[%c0_14, %c0_15] : memref<8x1xf32, #tpu.memory_space<vmem>>, vector<8x1xf32>
    tpu.vector_store %arg20[%c0_14, %c0_15], %11 {strides = array<i32>} : memref<8x1xf32, #tpu.memory_space<vmem>>, vector<8x1xf32>,
    %c2_i32 = arith.constant 2 : i32
    %24 = arith.cmpi eq, %arg0, %c2_i32 : i32
    %25 = arith.extui %24 : i1 to i32
    %c0_i32_16 = arith.constant 0 : i32
    %26 = arith.cmpi ne, %25, %c0_i32_16 : i32
    scf.if %26 {
      %c0_17 = arith.constant 0 : index
      %c0_18 = arith.constant 0 : index
      %27 = vector.load %arg20[%c0_17, %c0_18] : memref<8x1xf32, #tpu.memory_space<vmem>>, vector<8x1xf32>
      %c0_19 = arith.constant 0 : index
      %c0_20 = arith.constant 0 : index
      %28 = vector.load %arg17[%c0_19, %c0_20] : memref<8x1xf32, #tpu.memory_space<vmem>>, vector<8x1xf32>
      tpu.vector_store %arg17[%c0_19, %c0_20], %27 {strides = array<i32>} : memref<8x1xf32, #tpu.memory_space<vmem>>, vector<8x1xf32>,
      %c0_21 = arith.constant 0 : index
      %c0_22 = arith.constant 0 : index
      %29 = vector.load %arg21[%c0_21, %c0_22] : memref<8x1xf32, #tpu.memory_space<vmem>>, vector<8x1xf32>
      %30 = tpu.reciprocal %29 {approx = true} : vector<8x1xf32> -> vector<8x1xf32>
      %c0_23 = arith.constant 0 : index
      %c0_24 = arith.constant 0 : index
      %31 = vector.load %arg18[%c0_23, %c0_24] : memref<8x1xf32, #tpu.memory_space<vmem>>, vector<8x1xf32>
      tpu.vector_store %arg18[%c0_23, %c0_24], %30 {strides = array<i32>} : memref<8x1xf32, #tpu.memory_space<vmem>>, vector<8x1xf32>,
    } else {
    }
    return
  }
  func.func @transform_0(%arg0: i32) -> (i32, i32) {
    %c0_i32 = arith.constant 0 : i32
    %c0_i32_0 = arith.constant 0 : i32
    %c0_i32_1 = arith.constant 0 : i32
    return %c0_i32, %c0_i32_0 : i32, i32
  }
  func.func @transform_1(%arg0: i32) -> (i32, i32) {
    %c0_i32 = arith.constant 0 : i32
    %c0_i32_0 = arith.constant 0 : i32
    %c0_i32_1 = arith.constant 0 : i32
    return %c0_i32, %c0_i32_0 : i32, i32
  }
  func.func @transform_2(%arg0: i32) -> (i32, i32, i32) {
    %c0_i32 = arith.constant 0 : i32
    %c0_i32_0 = arith.constant 0 : i32
    %c0_i32_1 = arith.constant 0 : i32
    %c0_i32_2 = arith.constant 0 : i32
    return %c0_i32, %c0_i32_0, %c0_i32_1 : i32, i32, i32
  }
  func.func @transform_3(%arg0: i32) -> (i32, i32, i32) {
    %c0_i32 = arith.constant 0 : i32
    %c0_i32_0 = arith.constant 0 : i32
    %c0_i32_1 = arith.constant 0 : i32
    %c0_i32_2 = arith.constant 0 : i32
    return %c0_i32, %c0_i32_0, %c0_i32_1 : i32, i32, i32
  }
  func.func @transform_4(%arg0: i32) -> (i32, i32) {
    %c0_i32 = arith.constant 0 : i32
    %c0_i32_0 = arith.constant 0 : i32
    %c0_i32_1 = arith.constant 0 : i32
    return %c0_i32, %c0_i32_0 : i32, i32
  }
  func.func @transform_5(%arg0: i32) -> (i32, i32) {
    %c0_i32 = arith.constant 0 : i32
    %c0_i32_0 = arith.constant 0 : i32
    %c0_i32_1 = arith.constant 0 : i32
    return %c0_i32, %c0_i32_0 : i32, i32
  }
  func.func @transform_6(%arg0: i32) -> (i32, i32) {
    %c0_i32 = arith.constant 0 : i32
    %c0_i32_0 = arith.constant 0 : i32
    %c0_i32_1 = arith.constant 0 : i32
    return %c0_i32, %c0_i32_0 : i32, i32
  }
  func.func @transform_7(%arg0: i32) -> (i32, i32) {
    %c0_i32 = arith.constant 0 : i32
    %c0_i32_0 = arith.constant 0 : i32
    %c0_i32_1 = arith.constant 0 : i32
    return %c0_i32, %c0_i32_0 : i32, i32
  }
  func.func @transform_8(%arg0: i32) -> (i32, i32) {
    %c0_i32 = arith.constant 0 : i32
    %c0_i32_0 = arith.constant 0 : i32
    %c0_i32_1 = arith.constant 0 : i32
    return %c0_i32, %c0_i32_0 : i32, i32
  }
  func.func @transform_9(%arg0: i32) -> (i32, i32) {
    %c0_i32 = arith.constant 0 : i32
    %c0_i32_0 = arith.constant 0 : i32
    %c0_i32_1 = arith.constant 0 : i32
    return %c0_i32, %c0_i32_0 : i32, i32
  }
  func.func @transform_10(%arg0: i32) -> (i32, i32) {
    %c0_i32 = arith.constant 0 : i32
    %c0_i32_0 = arith.constant 0 : i32
    %c0_i32_1 = arith.constant 0 : i32
    return %c0_i32, %c0_i32_0 : i32, i32
  }
  func.func @transform_11(%arg0: i32) -> (i32, i32) {
    %c0_i32 = arith.constant 0 : i32
    %c0_i32_0 = arith.constant 0 : i32
    %c0_i32_1 = arith.constant 0 : i32
    return %c0_i32, %c0_i32_0 : i32, i32
  }
  func.func @transform_12(%arg0: i32) -> (i32, i32) {
    %c0_i32 = arith.constant 0 : i32
    %c0_i32_0 = arith.constant 0 : i32
    %c0_i32_1 = arith.constant 0 : i32
    return %c0_i32, %c0_i32_0 : i32, i32
  }
  func.func @transform_13(%arg0: i32) -> (i32, i32) {
    %c0_i32 = arith.constant 0 : i32
    %c0_i32_0 = arith.constant 0 : i32
    return %c0_i32, %arg0 : i32, i32
  }
  func.func @transform_14(%arg0: i32) -> (i32, i32) {
    %c0_i32 = arith.constant 0 : i32
    %c0_i32_0 = arith.constant 0 : i32
    return %c0_i32, %arg0 : i32, i32
  }
  func.func @transform_15(%arg0: i32) -> (i32, i32) {
    %c0_i32 = arith.constant 0 : i32
    %c0_i32_0 = arith.constant 0 : i32
    %c0_i32_1 = arith.constant 0 : i32
    return %c0_i32, %c0_i32_0 : i32, i32
  }
  func.func @transform_16(%arg0: i32) -> (i32, i32) {
    %c0_i32 = arith.constant 0 : i32
    %c0_i32_0 = arith.constant 0 : i32
    %c0_i32_1 = arith.constant 0 : i32
    return %c0_i32, %c0_i32_0 : i32, i32
  }
  func.func @transform_17(%arg0: i32) -> (i32, i32) {
    %c0_i32 = arith.constant 0 : i32
    %c0_i32_0 = arith.constant 0 : i32
    %c0_i32_1 = arith.constant 0 : i32
    return %c0_i32, %c0_i32_0 : i32, i32
  }
}

</mosaic_0001>

<bundles_post_ra>
// kernel: tpu_custom_call.1
= control target key start
LH: loop header
LB: loop body
LE: loop exit
PB: predicated region body
PF: predicated region fallthrough
CT: control target
= control target key end

     0   :  { %s4705_s0 = inlined_call_operand.hbm [shape: f32[8,128], index: 0, kind: input, shape index: {}]   ;;  %s4706_s1 = inlined_call_operand.hbm [shape: f32[8,128], index: 1, kind: input, shape index: {}]   ;;  %s4707_s2 = inlined_call_operand.hbm [shape: bf16[8,8,128], index: 2, kind: input, shape index: {}]   ;;  %s4708_s3 = inlined_call_operand.hbm [shape: bf16[8,8,128], index: 3, kind: input, shape index: {}]   ;;  %s4709_s4 = inlined_call_operand.hbm [shape: bf16[128,384], index: 4, kind: input, shape index: {}]   ;;  %s4710_s5 = inlined_call_operand.hbm [shape: bf16[128,384], index: 5, kind: input, shape index: {}]   ;;  %s4711_s6 = inlined_call_operand.hbm [shape: f32[1,384], index: 6, kind: input, shape index: {}]   ;;  %s4712_s7 = inlined_call_operand.hbm [shape: f32[1,384], index: 7, kind: input, shape index: {}]   ;;  %s4713_s8 = inlined_call_operand.hbm [shape: bf16[128,128], index: 8, kind: input, shape index: {}]   ;;  %s4714_s9 = inlined_call_operand.hbm [shape: f32[1,128], index: 9, kind: input, shape index: {}]   ;;  %s4715_s10 = inlined_call_operand.hbm [shape: bf16[128,128], index: 10, kind: input, shape index: {}]   ;;  %s4716_s11 = inlined_call_operand.hbm [shape: bf16[128,128], index: 11, kind: input, shape index: {}]   ;;  %s4717_s12 = inlined_call_operand.hbm [shape: f32[1,128], index: 12, kind: input, shape index: {}]   ;;  %s4718_s13 = inlined_call_operand.hbm [shape: bf16[128,384], index: 13, kind: input, shape index: {}]   ;;  %s4719_s14 = inlined_call_operand.hbm [shape: bf16[8,384], index: 14, kind: output, shape index: {0}]   ;;  %s4720_s15 = inlined_call_operand.hbm [shape: f32[8,128], index: 15, kind: output, shape index: {1}]   ;;  %s4721_s16 = inlined_call_operand.hbm [shape: f32[8,1], index: 16, kind: output, shape index: {2}]   ;;  %s4722_s17 = inlined_call_operand.hbm [shape: f32[8,1], index: 17, kind: output, shape index: {3}]  }
   0x1   :  { %4747 = sst [smem:[#allocation48_spill]] %s4705_s0 }
   0x2   :  { %4748 = sst [smem:[#allocation49_spill]] %s4706_s1 }
   0x3   :  { %4749 = sst [smem:[#allocation50_spill]] %s4707_s2 }
   0x4   :  { %4750 = sst [smem:[#allocation51_spill]] %s4708_s3 }
   0x5   :  { %4751 = sst [smem:[#allocation52_spill]] %s4709_s4 }
   0x6   :  { %4752 = sst [smem:[#allocation53_spill]] %s4710_s5 }
   0x7   :  { %4753 = sst [smem:[#allocation54_spill]] %s4711_s6 }
   0x8   :  { %4754 = sst [smem:[#allocation55_spill]] %s4718_s13 }
   0x9   :  { %4755 = sst [smem:[#allocation56_spill]] %s4719_s14 }
   0xa   :  { %4756 = sst [smem:[#allocation57_spill]] %s4720_s15 }
   0xb   :  { %4757 = sst [smem:[#allocation58_spill]] %s4721_s16 }
   0xc   :  { %4758 = sst [smem:[#allocation59_spill]] %s4722_s17 }
   0xd   :  { %23 = vsyncpa [#allocation6], 0 }
   0xe   :  { %24 = vsyncpa [#allocation9], 0 }
   0xf   :  { %25 = vsyncpa [#allocation12], 0 }
  0x10   :  { %26 = vsyncpa [#allocation15], 0 }
  0x11   :  { %27 = vsyncpa [#allocation18], 0 }
  0x12   :  { %28 = vsyncpa [#allocation21], 0 }
  0x13   :  { %29 = vsyncpa [#allocation24], 0 }
  0x14   :  { %30 = vsyncpa [#allocation27], 0 }
  0x15   :  { %32 = vsyncpa [#allocation27 + $0x1], 0 }
  0x16   :  { %33 = vsyncpa [#allocation7], 0 }
  0x17   :  { %35 = vsyncpa [#allocation7 + $0x1], 0 }
  0x18   :  { %36 = vsyncpa [#allocation30], 0 }
  0x19   :  { %37 = vsyncpa [#allocation33], 0  ;;  %s3981_s24 = smov 0   ;;  %s3983_s25 = smov 0  }
  0x1a   :  { %s3985_s26 = smov 0   ;;  %s3987_s27 = smov 0  }
  0x1b LB: > { %4759 = sst [smem:[#allocation45_spill]] %s3847_s24  ;;  %s3861_s28 = smov [#allocation8]   ;;  %s3859_s27 = sphi %s3987_s27, %s4827_s27   ;;  %s3855_s26 = sphi %s3985_s26, %s4826_s26   ;;  %s3851_s25 = sphi %s3983_s25, %s4825_s25   ;;  %s3847_s24 = sphi %s3981_s24, %s4824_s24  }
  0x1c   : > { %s460_s29 = sshll.u32 %s3861_s28, 4  ;;  %s4002_s0 = sadd.s32 4294967295, %s3859_s27   ;;  %s461_s29 = int_to_ptr.vmem [resolvable:$true] %s460_s29 }
  0x1d   : > { %4760 = sst [smem:[#allocation46_spill]] %s4002_s0  ;;  %p2575_p0 = scmp.ge.s32.totalorder %s3859_s27, 1 }
  0x1e   : > { %p4729_p1 = scmp.eq.s32.totalorder %s4002_s0, 0  ;;  %p436_p2 = scmp.lt.s32.totalorder %s3859_s27, 4 }
  0x1f   : > { %s3862_s18 = smov [#allocation11]   ;;  %s3863_s20 = smov [#allocation14]  }
  0x20   : > { %p4008_p4 = pnand %p2575_p0, %p436_p2  ;;  %s483_s19 = sshll.u32 %s3862_s18, 4  ;;  %s4020_s19 = int_to_ptr.vmem [resolvable:$true] %s483_s19 }
  0x21   : > { %s4022_s21 = sshll.u32 %s3863_s20, 4  ;;  %s4764_s28 = sld [smem:[#allocation49_spill]]  ;;  %s510_s21 = int_to_ptr.vmem [resolvable:$true] %s4022_s21 }
  0x22   : > { %s4761_s30 = scalar_select %p4008_p4, 1, 0 }
  0x23   : > { %p2992_p5 = pneg %p4008_p4 }
  0x24   : > { %4762 = sst [smem:[#allocation47_spill]] %s4761_s30 }
  0x25   : > { %p4016_p6 = pnand %p2992_p5, %p4729_p1 }
  0x27   : > { %s3285_s17 = scalar_lea.hbm %s4764_s28, 128  ;;  %p4032_p8 = pneg %p4016_p6 }
  0x28   : > { %p3286_p7 = scmp.ne.s32.totalorder %s4764_s28, %s3285_s17  ;;  %p3292_p11 = scmp.lt.u32.totalorder %s3285_s17, %s4764_s28 }
  0x2a   : > { %p3288_p9 = pnand %p4032_p8, %p3286_p7 }
  0x2c   : > { %p3289_p10 = pneg %p3288_p9 }
  0x2e   : > { %p3294_p12 = pnand %p3292_p11, %p3289_p10 }
  0x30   : > { %3297 = shalt.err (!%p3294_p12)
}
  0x31   : > { %s3298_s22 = scalar_lea.vmem %s461_s29, 128  ;;  %p3306_p5 = scmp.lt.s32.totalorder %s461_s29, %s461_s29 }
  0x32   : > { %p3299_p13 = scmp.ne.s32.totalorder %s461_s29, %s3298_s22  ;;  %p3307_p3 = scmp.lt.s32.totalorder %s3298_s22, %s3298_s22 }
  0x34   : > { %p3301_p0 = pnand %p3299_p13, %p4032_p8  ;;  %p3308_p1 = por %p3307_p3, %p3306_p5 }
  0x36   : > { %p3302_p2 = pneg %p3301_p0 }
  0x38   : > { %p3309_p4 = pnand %p3308_p1, %p3302_p2 }
  0x3a   : > { %3312 = shalt.err (!%p3309_p4)
}
  0x3b   : > { %2998 = dma.hbm_to_vmem [thread:$0]  (!%p4016_p6), %s4764_s28, 128, %s461_s29, [#allocation9]  }
  0x3c   : > { %s4766_s3 = sld [smem:[#allocation51_spill]] }
  0x42   : > { %s3313_s23 = scalar_lea.hbm %s4766_s3, 512 }
  0x43   : > { %p3314_p7 = scmp.ne.s32.totalorder %s4766_s3, %s3313_s23  ;;  %p3320_p1 = scmp.lt.u32.totalorder %s3313_s23, %s4766_s3 }
  0x45   : > { %p3316_p9 = pnand %p3314_p7, %p4032_p8 }
  0x47   : > { %p3317_p3 = pneg %p3316_p9 }
  0x49   : > { %p3322_p4 = pnand %p3320_p1, %p3317_p3 }
  0x4b   : > { %3325 = shalt.err (!%p3322_p4)
}
  0x4c   : > { %s3326_s29 = scalar_lea.vmem %s4020_s19, 512  ;;  %p3334_p13 = scmp.lt.s32.totalorder %s4020_s19, %s4020_s19 }
  0x4d   : > { %p3327_p10 = scmp.ne.s32.totalorder %s4020_s19, %s3326_s29  ;;  %p3335_p0 = scmp.lt.s32.totalorder %s3326_s29, %s3326_s29 }
  0x4f   : > { %p3329_p11 = pnand %p3327_p10, %p4032_p8  ;;  %p3336_p2 = por %p3335_p0, %p3334_p13 }
  0x51   : > { %p3330_p12 = pneg %p3329_p11 }
  0x53   : > { %p3337_p5 = pnand %p3336_p2, %p3330_p12 }
  0x55   : > { %3340 = shalt.err (!%p3337_p5)
}
  0x56   : > { %s4734_s30 = smov 64   ;;  %s4736_s13 = smov 4  }
  0x57   : > { %3004 = dma.hbm_to_vmem [thread:$0]  (!%p4016_p6), %s4766_s3, 512, %s4020_s19, [#allocation12], %s4734_s30, %s4734_s30, %s4736_s13  }
  0x58   : > { %s4767_s5 = sld [smem:[#allocation53_spill]] }
  0x5e   : > { %s3341_s23 = scalar_lea.hbm %s4767_s5, 3072 }
  0x5f   : > { %p3342_p7 = scmp.ne.s32.totalorder %s4767_s5, %s3341_s23  ;;  %p3348_p1 = scmp.lt.u32.totalorder %s3341_s23, %s4767_s5 }
  0x61   : > { %p3344_p9 = pnand %p3342_p7, %p4032_p8 }
  0x63   : > { %p3345_p3 = pneg %p3344_p9 }
  0x65   : > { %p3350_p4 = pnand %p3348_p1, %p3345_p3 }
  0x67   : > { %3353 = shalt.err (!%p3350_p4)
}
  0x68   : > { %s3354_s15 = scalar_lea.vmem %s510_s21, 3072  ;;  %p3362_p13 = scmp.lt.s32.totalorder %s510_s21, %s510_s21 }
  0x69   : > { %p3355_p10 = scmp.ne.s32.totalorder %s510_s21, %s3354_s15  ;;  %p3363_p0 = scmp.lt.s32.totalorder %s3354_s15, %s3354_s15 }
  0x6b   : > { %p3357_p11 = pnand %p3355_p10, %p4032_p8  ;;  %p3364_p2 = por %p3363_p0, %p3362_p13 }
  0x6d   : > { %p3358_p12 = pneg %p3357_p11 }
  0x6f   : > { %p3365_p5 = pnand %p3364_p2, %p3358_p12 }
  0x71   : > { %3368 = shalt.err (!%p3365_p5)
}
  0x72   : > { %s4742_s19 = smov 192   ;;  %s4744_s16 = smov 12  }
  0x73   : > { %3010 = dma.hbm_to_vmem [thread:$0]  (!%p4016_p6), %s4767_s5, 3072, %s510_s21, [#allocation15], %s4742_s19, %s4742_s19, %s4744_s16  }
  0x74   : > { %s3868_s17 = smov [#allocation17]   ;;  %s3869_s20 = smov [#allocation20]  }
  0x75   : > { %s534_s23 = sshll.u32 %s3868_s17, 4  ;;  %s558_s22 = sshll.u32 %s3869_s20, 4  ;;  %s535_s23 = int_to_ptr.vmem [resolvable:$true] %s534_s23  ;;  %s559_s22 = int_to_ptr.vmem [resolvable:$true] %s558_s22 }
  0x76   : > { %s3369_s30 = scalar_lea.hbm %s4712_s7, 48 }
  0x77   : > { %p3370_p7 = scmp.ne.s32.totalorder %s4712_s7, %s3369_s30  ;;  %p3376_p1 = scmp.lt.u32.totalorder %s3369_s30, %s4712_s7 }
  0x79   : > { %p3372_p9 = pnand %p3370_p7, %p4032_p8 }
  0x7b   : > { %p3373_p3 = pneg %p3372_p9 }
  0x7d   : > { %p3378_p4 = pnand %p3376_p1, %p3373_p3 }
  0x7f   : > { %3381 = shalt.err (!%p3378_p4)
}
  0x80   : > { %s3382_s21 = scalar_lea.vmem %s535_s23, 48  ;;  %s3389_s28 = scalar_lea.vmem %s535_s23, 64 }
  0x81   : > { %p3383_p10 = scmp.ne.s32.totalorder %s535_s23, %s3382_s21  ;;  %p3390_p13 = scmp.lt.s32.totalorder %s535_s23, %s535_s23 }
  0x82   : > { %p3391_p0 = scmp.lt.s32.totalorder %s3389_s28, %s3382_s21 }
  0x83   : > { %p3385_p11 = pnand %p3383_p10, %p4032_p8 }
  0x84   : > { %p3392_p2 = por %p3391_p0, %p3390_p13 }
  0x85   : > { %p3386_p12 = pneg %p3385_p11 }
  0x87   : > { %p3393_p5 = pnand %p3392_p2, %p3386_p12 }
  0x89   : > { %3396 = shalt.err (!%p3393_p5)
}
  0x8a   : > { %3016 = dma.hbm_to_vmem [thread:$0]  (!%p4016_p6), %s4712_s7, 48, %s535_s23, [#allocation18]  }
  0x8b   : > { %s3397_s30 = scalar_lea.hbm %s4714_s9, 16 }
  0x8c   : > { %p3398_p7 = scmp.ne.s32.totalorder %s4714_s9, %s3397_s30  ;;  %p3404_p1 = scmp.lt.u32.totalorder %s3397_s30, %s4714_s9 }
  0x8e   : > { %p3400_p9 = pnand %p3398_p7, %p4032_p8 }
  0x90   : > { %p3401_p3 = pneg %p3400_p9 }
  0x92   : > { %p3406_p4 = pnand %p3404_p1, %p3401_p3 }
  0x94   : > { %3409 = shalt.err (!%p3406_p4)
}
  0x95   : > { %s3410_s15 = scalar_lea.vmem %s559_s22, 16  ;;  %s3417_s23 = scalar_lea.vmem %s559_s22, 32 }
  0x96   : > { %p3411_p10 = scmp.ne.s32.totalorder %s559_s22, %s3410_s15  ;;  %p3418_p13 = scmp.lt.s32.totalorder %s559_s22, %s559_s22 }
  0x97   : > { %p3419_p0 = scmp.lt.s32.totalorder %s3417_s23, %s3410_s15 }
  0x98   : > { %p3413_p11 = pnand %p3411_p10, %p4032_p8 }
  0x99   : > { %p3420_p2 = por %p3419_p0, %p3418_p13 }
  0x9a   : > { %p3414_p12 = pneg %p3413_p11 }
  0x9c   : > { %p3421_p5 = pnand %p3420_p2, %p3414_p12 }
  0x9e   : > { %3424 = shalt.err (!%p3421_p5)
}
  0x9f   : > { %3022 = dma.hbm_to_vmem [thread:$0]  (!%p4016_p6), %s4714_s9, 16, %s559_s22, [#allocation21]  }
  0xa0   : > { %s3870_s3 = smov [#allocation23]   ;;  %s3871_s24 = smov [#allocation5]  }
  0xa1   : > { %s581_s13 = sshll.u32 %s3870_s3, 4  ;;  %s449_s0 = sshll.u32 %s3871_s24, 4  ;;  %s582_s13 = int_to_ptr.vmem [resolvable:$true] %s581_s13  ;;  %s450_s0 = int_to_ptr.vmem [resolvable:$true] %s449_s0 }
  0xa2   : > { %s3425_s17 = scalar_lea.hbm %s4716_s11, 1024 }
  0xa3   : > { %p3426_p7 = scmp.ne.s32.totalorder %s4716_s11, %s3425_s17  ;;  %p3432_p1 = scmp.lt.u32.totalorder %s3425_s17, %s4716_s11 }
  0xa5   : > { %p3428_p9 = pnand %p3426_p7, %p4032_p8 }
  0xa7   : > { %p3429_p3 = pneg %p3428_p9 }
  0xa9   : > { %p3434_p4 = pnand %p3432_p1, %p3429_p3 }
  0xab   : > { %3437 = shalt.err (!%p3434_p4)
}
  0xac   : > { %s3438_s22 = scalar_lea.vmem %s582_s13, 1024  ;;  %p3446_p13 = scmp.lt.s32.totalorder %s582_s13, %s582_s13 }
  0xad   : > { %p3439_p10 = scmp.ne.s32.totalorder %s582_s13, %s3438_s22  ;;  %p3447_p0 = scmp.lt.s32.totalorder %s3438_s22, %s3438_s22 }
  0xaf   : > { %p3441_p11 = pnand %p3439_p10, %p4032_p8  ;;  %p3448_p2 = por %p3447_p0, %p3446_p13 }
  0xb1   : > { %p3442_p12 = pneg %p3441_p11 }
  0xb3   : > { %p3449_p5 = pnand %p3448_p2, %p3442_p12 }
  0xb5   : > { %3452 = shalt.err (!%p3449_p5)
}
  0xb6   : > { %s4768_s21 = smov 4   ;;  %s4769_s28 = smov 64  }
  0xb7   : > { %3028 = dma.hbm_to_vmem [thread:$0]  (!%p4016_p6), %s4716_s11, 1024, %s582_s13, [#allocation24], %s4769_s28, %s4769_s28, %s4768_s21  }
  0xb8   : > { %s4770_s17 = sld [smem:[#allocation48_spill]] }
  0xbe   : > { %s3453_s20 = scalar_lea.hbm %s4770_s17, 128 }
  0xbf   : > { %p3454_p7 = scmp.ne.s32.totalorder %s4770_s17, %s3453_s20  ;;  %p3460_p1 = scmp.lt.u32.totalorder %s3453_s20, %s4770_s17 }
  0xc1   : > { %p3456_p9 = pnand %p3454_p7, %p4032_p8 }
  0xc3   : > { %p3457_p3 = pneg %p3456_p9 }
  0xc5   : > { %p3462_p4 = pnand %p3460_p1, %p3457_p3 }
  0xc7   : > { %3465 = shalt.err (!%p3462_p4)
}
  0xc8   : > { %s3466_s3 = scalar_lea.vmem %s450_s0, 128  ;;  %p3474_p13 = scmp.lt.s32.totalorder %s450_s0, %s450_s0 }
  0xc9   : > { %p3467_p10 = scmp.ne.s32.totalorder %s450_s0, %s3466_s3  ;;  %p3475_p0 = scmp.lt.s32.totalorder %s3466_s3, %s3466_s3 }
  0xcb   : > { %p3469_p11 = pnand %p3467_p10, %p4032_p8  ;;  %p3476_p2 = por %p3475_p0, %p3474_p13 }
  0xcd   : > { %p3470_p12 = pneg %p3469_p11 }
  0xcf   : > { %p3477_p5 = pnand %p3476_p2, %p3470_p12 }
  0xd1   : > { %3480 = shalt.err (!%p3477_p5)
}
  0xd2   : > { %2995 = dma.hbm_to_vmem [thread:$0]  (!%p4016_p6), %s4770_s17, 128, %s450_s0, [#allocation6]  }
  0xd3   : > { %s3872_s30 = smov [#allocation10]   ;;  %s3873_s20 = smov [#allocation13]  }
  0xd4   : > { %s470_s14 = sshll.u32 %s3872_s30, 4  ;;  %s496_s29 = sshll.u32 %s3873_s20, 4  ;;  %s471_s14 = int_to_ptr.vmem [resolvable:$true] %s470_s14  ;;  %s497_s29 = int_to_ptr.vmem [resolvable:$true] %s496_s29 }
  0xd5   : > { %s4771_s2 = sld [smem:[#allocation50_spill]] }
  0xdb   : > { %s3481_s22 = scalar_lea.hbm %s4771_s2, 512 }
  0xdc   : > { %p3482_p7 = scmp.ne.s32.totalorder %s4771_s2, %s3481_s22  ;;  %p3488_p1 = scmp.lt.u32.totalorder %s3481_s22, %s4771_s2 }
  0xde   : > { %p3484_p9 = pnand %p3482_p7, %p4032_p8 }
  0xe0   : > { %p3485_p3 = pneg %p3484_p9 }
  0xe2   : > { %p3490_p4 = pnand %p3488_p1, %p3485_p3 }
  0xe4   : > { %3493 = shalt.err (!%p3490_p4)
}
  0xe5   : > { %s3494_s0 = scalar_lea.vmem %s471_s14, 512  ;;  %p3502_p13 = scmp.lt.s32.totalorder %s471_s14, %s471_s14 }
  0xe6   : > { %p3495_p10 = scmp.ne.s32.totalorder %s471_s14, %s3494_s0  ;;  %p3503_p0 = scmp.lt.s32.totalorder %s3494_s0, %s3494_s0 }
  0xe8   : > { %p3497_p11 = pnand %p3495_p10, %p4032_p8  ;;  %p3504_p2 = por %p3503_p0, %p3502_p13 }
  0xea   : > { %p3498_p12 = pneg %p3497_p11 }
  0xec   : > { %p3505_p5 = pnand %p3504_p2, %p3498_p12 }
  0xee   : > { %3508 = shalt.err (!%p3505_p5)
}
  0xef   : > { %3001 = dma.hbm_to_vmem [thread:$0]  (!%p4016_p6), %s4771_s2, 512, %s471_s14, [#allocation9], %s4769_s28, %s4769_s28, %s4768_s21  }
  0xf0   : > { %s4772_s4 = sld [smem:[#allocation52_spill]] }
  0xf6   : > { %s3509_s20 = scalar_lea.hbm %s4772_s4, 3072 }
  0xf7   : > { %p3510_p7 = scmp.ne.s32.totalorder %s4772_s4, %s3509_s20  ;;  %p3516_p1 = scmp.lt.u32.totalorder %s3509_s20, %s4772_s4 }
  0xf9   : > { %p3512_p9 = pnand %p3510_p7, %p4032_p8 }
  0xfb   : > { %p3513_p3 = pneg %p3512_p9 }
  0xfd   : > { %p3518_p4 = pnand %p3516_p1, %p3513_p3 }
  0xff   : > { %3521 = shalt.err (!%p3518_p4)
}
 0x100   : > { %s3522_s13 = scalar_lea.vmem %s497_s29, 3072  ;;  %p3530_p13 = scmp.lt.s32.totalorder %s497_s29, %s497_s29 }
 0x101   : > { %p3523_p10 = scmp.ne.s32.totalorder %s497_s29, %s3522_s13  ;;  %p3531_p0 = scmp.lt.s32.totalorder %s3522_s13, %s3522_s13 }
 0x103   : > { %p3525_p11 = pnand %p3523_p10, %p4032_p8  ;;  %p3532_p2 = por %p3531_p0, %p3530_p13 }
 0x105   : > { %p3526_p12 = pneg %p3525_p11 }
 0x107   : > { %p3533_p5 = pnand %p3532_p2, %p3526_p12 }
 0x109   : > { %3536 = shalt.err (!%p3533_p5)
}
 0x10a   : > { %s4773_s14 = smov 12   ;;  %s4774_s0 = smov 192  }
 0x10b   : > { %3007 = dma.hbm_to_vmem [thread:$0]  (!%p4016_p6), %s4772_s4, 3072, %s497_s29, [#allocation12], %s4774_s0, %s4774_s0, %s4773_s14  }
 0x10c   : > { %s3874_s24 = smov [#allocation16]   ;;  %s3875_s20 = smov [#allocation19]  }
 0x10d   : > { %s523_s30 = sshll.u32 %s3874_s24, 4  ;;  %s544_s15 = sshll.u32 %s3875_s20, 4  ;;  %s524_s30 = int_to_ptr.vmem [resolvable:$true] %s523_s30  ;;  %s545_s15 = int_to_ptr.vmem [resolvable:$true] %s544_s15 }
 0x10e   : > { %s4775_s6 = sld [smem:[#allocation54_spill]] }
 0x114   : > { %s3537_s3 = scalar_lea.hbm %s4775_s6, 48 }
 0x115   : > { %p3538_p7 = scmp.ne.s32.totalorder %s4775_s6, %s3537_s3  ;;  %p3544_p1 = scmp.lt.u32.totalorder %s3537_s3, %s4775_s6 }
 0x117   : > { %p3540_p9 = pnand %p3538_p7, %p4032_p8 }
 0x119   : > { %p3541_p3 = pneg %p3540_p9 }
 0x11b   : > { %p3546_p4 = pnand %p3544_p1, %p3541_p3 }
 0x11d   : > { %3549 = shalt.err (!%p3546_p4)
}
 0x11e   : > { %s3550_s29 = scalar_lea.vmem %s524_s30, 48  ;;  %s3557_s14 = scalar_lea.vmem %s524_s30, 64 }
 0x11f   : > { %p3551_p10 = scmp.ne.s32.totalorder %s524_s30, %s3550_s29  ;;  %p3558_p13 = scmp.lt.s32.totalorder %s524_s30, %s524_s30 }
 0x120   : > { %p3559_p0 = scmp.lt.s32.totalorder %s3557_s14, %s3550_s29 }
 0x121   : > { %p3553_p11 = pnand %p3551_p10, %p4032_p8 }
 0x122   : > { %p3560_p2 = por %p3559_p0, %p3558_p13 }
 0x123   : > { %p3554_p12 = pneg %p3553_p11 }
 0x125   : > { %p3561_p5 = pnand %p3560_p2, %p3554_p12 }
 0x127   : > { %3564 = shalt.err (!%p3561_p5)
}
 0x128   : > { %3013 = dma.hbm_to_vmem [thread:$0]  (!%p4016_p6), %s4775_s6, 48, %s524_s30, [#allocation15]  }
 0x129   : > { %s3565_s20 = scalar_lea.hbm %s4713_s8, 1024 }
 0x12a   : > { %p3566_p7 = scmp.ne.s32.totalorder %s4713_s8, %s3565_s20  ;;  %p3572_p1 = scmp.lt.u32.totalorder %s3565_s20, %s4713_s8 }
 0x12c   : > { %p3568_p9 = pnand %p3566_p7, %p4032_p8 }
 0x12e   : > { %p3569_p3 = pneg %p3568_p9 }
 0x130   : > { %p3574_p4 = pnand %p3572_p1, %p3569_p3 }
 0x132   : > { %3577 = shalt.err (!%p3574_p4)
}
 0x133   : > { %s3578_s19 = scalar_lea.vmem %s545_s15, 1024  ;;  %p3586_p13 = scmp.lt.s32.totalorder %s545_s15, %s545_s15 }
 0x134   : > { %p3579_p10 = scmp.ne.s32.totalorder %s545_s15, %s3578_s19  ;;  %p3587_p0 = scmp.lt.s32.totalorder %s3578_s19, %s3578_s19 }
 0x136   : > { %p3581_p11 = pnand %p3579_p10, %p4032_p8  ;;  %p3588_p2 = por %p3587_p0, %p3586_p13 }
 0x138   : > { %p3582_p12 = pneg %p3581_p11 }
 0x13a   : > { %p3589_p5 = pnand %p3588_p2, %p3582_p12 }
 0x13c   : > { %3592 = shalt.err (!%p3589_p5)
}
 0x13d   : > { %3019 = dma.hbm_to_vmem [thread:$0]  (!%p4016_p6), %s4713_s8, 1024, %s545_s15, [#allocation18], %s4769_s28, %s4769_s28, %s4768_s21  }
 0x13e   : > { %s3876_s14 = smov [#allocation22]   ;;  %s3877_s16 = smov [#allocation25]  }
 0x13f   : > { %s568_s2 = sshll.u32 %s3876_s14, 4  ;;  %s595_s5 = sshll.u32 %s3877_s16, 4  ;;  %s569_s2 = int_to_ptr.vmem [resolvable:$true] %s568_s2  ;;  %s596_s5 = int_to_ptr.vmem [resolvable:$true] %s595_s5 }
 0x140   : > { %s3593_s23 = scalar_lea.hbm %s4715_s10, 1024 }
 0x141   : > { %p3594_p7 = scmp.ne.s32.totalorder %s4715_s10, %s3593_s23  ;;  %p3600_p1 = scmp.lt.u32.totalorder %s3593_s23, %s4715_s10 }
 0x143   : > { %p3596_p9 = pnand %p3594_p7, %p4032_p8 }
 0x145   : > { %p3597_p3 = pneg %p3596_p9 }
 0x147   : > { %p3602_p4 = pnand %p3600_p1, %p3597_p3 }
 0x149   : > { %3605 = shalt.err (!%p3602_p4)
}
 0x14a   : > { %s3606_s15 = scalar_lea.vmem %s569_s2, 1024  ;;  %p3614_p13 = scmp.lt.s32.totalorder %s569_s2, %s569_s2 }
 0x14b   : > { %p3607_p10 = scmp.ne.s32.totalorder %s569_s2, %s3606_s15  ;;  %p3615_p0 = scmp.lt.s32.totalorder %s3606_s15, %s3606_s15 }
 0x14d   : > { %p3609_p11 = pnand %p3607_p10, %p4032_p8  ;;  %p3616_p2 = por %p3615_p0, %p3614_p13 }
 0x14f   : > { %p3610_p12 = pneg %p3609_p11 }
 0x151   : > { %p3617_p5 = pnand %p3616_p2, %p3610_p12 }
 0x153   : > { %3620 = shalt.err (!%p3617_p5)
}
 0x154   : > { %3025 = dma.hbm_to_vmem [thread:$0]  (!%p4016_p6), %s4715_s10, 1024, %s569_s2, [#allocation21], %s4769_s28, %s4769_s28, %s4768_s21  }
 0x155   : > { %s3621_s24 = scalar_lea.hbm %s4717_s12, 16 }
 0x156   : > { %p3622_p7 = scmp.ne.s32.totalorder %s4717_s12, %s3621_s24  ;;  %p3628_p1 = scmp.lt.u32.totalorder %s3621_s24, %s4717_s12 }
 0x158   : > { %p3624_p9 = pnand %p3622_p7, %p4032_p8 }
 0x15a   : > { %p3625_p3 = pneg %p3624_p9 }
 0x15c   : > { %p3630_p4 = pnand %p3628_p1, %p3625_p3 }
 0x15e   : > { %3633 = shalt.err (!%p3630_p4)
}
 0x15f   : > { %s3634_s13 = scalar_lea.vmem %s596_s5, 16  ;;  %s3641_s2 = scalar_lea.vmem %s596_s5, 32 }
 0x160   : > { %p3635_p10 = scmp.ne.s32.totalorder %s596_s5, %s3634_s13  ;;  %p3642_p13 = scmp.lt.s32.totalorder %s596_s5, %s596_s5 }
 0x161   : > { %p3643_p0 = scmp.lt.s32.totalorder %s3641_s2, %s3634_s13 }
 0x162   : > { %p3637_p11 = pnand %p3635_p10, %p4032_p8 }
 0x163   : > { %p3644_p2 = por %p3643_p0, %p3642_p13 }
 0x164   : > { %p3638_p12 = pneg %p3637_p11 }
 0x166   : > { %p3645_p5 = pnand %p3644_p2, %p3638_p12 }
 0x168   : > { %3648 = shalt.err (!%p3645_p5)
}
 0x169   : > { %s4776_s18 = sld [smem:[#allocation45_spill]]  ;;  %s4777_s30 = sld [smem:[#allocation46_spill]] }
 0x16a   : > { %3031 = dma.hbm_to_vmem [thread:$0]  (!%p4016_p6), %s4717_s12, 16, %s596_s5, [#allocation24]  }
 0x16b   : > { %s2574_s1 = sadd.s32 4294967294, %s3859_s27   ;;  %s4293_s29 = sadd.s32 1, %s3859_s27  }
 0x16c   : > { %s323_s14 = sadd.s32 1, %s3855_s26  ;;  %s320_s16 = ssub.s32 %s3859_s27, %s4293_s29 }
 0x16d   : > { %p330_p8 = scmp.ne.s32.totalorder %s3855_s26, %s3851_s25  ;;  %p321_p7 = scmp.eq.s32.totalorder %s320_s16, 0 }
 0x16e   : > { %p331_p9 = scmp.eq.s32.totalorder %s3859_s27, 0  ;;  %p366_p12 = scmp.eq.s32.totalorder %s2574_s1, 2 }
 0x16f   : > { %p336_p3 = scmp.ne.s32.totalorder %s3851_s25, %s4776_s18  ;;  %p4745_p1 = scmp.eq.s32.totalorder %s4777_s30, 2 }
 0x170   : > { %s4305_s24 = scalar_select %p321_p7, %s3855_s26, %s323_s14  }
 0x171   : > { %p332_p4 = por %p331_p9, %p330_p8  ;;  %p4778_p10 = scmp.eq.s32.totalorder %s4777_s30, 0 }
 0x172   : > { %p4315_p6 = por %p4745_p1, %p330_p8  ;;  %p3053_p13 = scmp.lt.s32.totalorder %s3859_s27, 3 }
 0x173   : > { %p4309_p11 = por %p4778_p10, %p336_p3  ;;  %s606_s23 = sand.u32 1, %s3855_s26  }
 0x174   : > { %s4780_s5 = scalar_select %p4315_p6, 1, 0 }
 0x175   : > { %p4321_p0 = por %p366_p12, %p336_p3  ;;  %s2590_s3 = sshll.u32 %s606_s23, 6 }
 0x176   : > { %s2591_s13 = sshll.u32 %s3859_s27, 6  ;;  %s4782_s15 = sld [smem:[#allocation55_spill]] }
 0x177   : > { %s4781_s22 = scalar_select %p4321_p0, 1, 0 }
 0x178   : > { %s610_s30 = scalar_lea.vmem [#allocation26], %s2590_s3  ;;  %p4331_p2 = pnand %p3053_p13, %p332_p4 }
 0x179   : > { %s616_s14 = sshll.u32 %s610_s30, 4  ;;  %s4337_s16 = scalar_lea.sflag [#allocation27], %s606_s23  ;;  %s4335_s14 = int_to_ptr.vmem [resolvable:$true] %s616_s14 }
 0x17a   : > { %p3651_p8 = pneg %p4331_p2 }
 0x17c   : > { %s4329_s18 = scalar_lea.hbm %s4782_s15, %s2591_s13  ;;  %s3654_s2 = scalar_lea.hbm %s4782_s15, 3072 }
 0x17d   : > { %s3649_s4 = scalar_lea.hbm %s4329_s18, 1024  ;;  %p3655_p3 = scmp.lt.u32.totalorder %s4329_s18, %s4782_s15 }
 0x17e   : > { %p3650_p5 = scmp.ne.s32.totalorder %s4329_s18, %s3649_s4  ;;  %p3656_p4 = scmp.lt.u32.totalorder %s3654_s2, %s3649_s4 }
 0x17f   : > { %p3658_p12 = scmp.lt.u32.totalorder %s3649_s4, %s4329_s18 }
 0x180   : > { %p3652_p7 = pnand %p3651_p8, %p3650_p5  ;;  %p3657_p10 = por %p3656_p4, %p3655_p3 }
 0x182   : > { %p3653_p9 = pneg %p3652_p7  ;;  %p3659_p13 = por %p3658_p12, %p3657_p10 }
 0x184   : > { %p3660_p1 = pnand %p3659_p13, %p3653_p9 }
 0x186   : > { %3663 = shalt.err (!%p3660_p1)
}
 0x187   : > { %s3664_s23 = scalar_lea.vmem %s4335_s14, 1024  ;;  %s3878_s3 = smov [#allocation26]  }
 0x188   : > { %p3665_p5 = scmp.ne.s32.totalorder %s4335_s14, %s3664_s23  ;;  %s3669_s13 = sshll.u32 %s3878_s3, 4  ;;  %s3670_s13 = int_to_ptr.vmem [resolvable:$false] %s3669_s13 }
 0x189   : > { %s3671_s19 = scalar_lea.vmem %s3670_s13, 2048  ;;  %p3672_p6 = scmp.lt.s32.totalorder %s4335_s14, %s3670_s13 }
 0x18a   : > { %p3667_p7 = pnand %p3665_p5, %p3651_p8  ;;  %p3673_p3 = scmp.lt.s32.totalorder %s3671_s19, %s3664_s23 }
 0x18c   : > { %p3668_p0 = pneg %p3667_p7  ;;  %p3674_p4 = por %p3673_p3, %p3672_p6 }
 0x18e   : > { %p3675_p10 = pnand %p3674_p4, %p3668_p0 }
 0x190   : > { %3678 = shalt.err (!%p3675_p10)
}
 0x191   : > { %3035 = dma.hbm_to_vmem [thread:$0]  (!%p4331_p2), %s4329_s18, 1024, %s4335_s14, %s4337_s16, %s4774_s0, %s4769_s28, %s4768_s21  }
 0x192   : > { %s4784_s4 = sld [smem:[#allocation47_spill]] }
 0x198   : > { %p4785_p1 = scmp.ne.s32.totalorder %s4784_s4, 0 }
 0x199   : > { %s4786_s2 = sld [smem:[#allocation46_spill]] (!%p4785_p1) }
 0x19a   : > { %628 = sbr.rel (%p4785_p1) target bundleno = 2860 (0xb2c), region = 76 }
 0x19f   : > { %p4787_p8 = scmp.eq.s32.totalorder (!%p4785_p1), %s4786_s2, 0 }
 0x1a1   : > { %3802 = dma.done.wait (%p4787_p8), [#allocation6], 128   ;;  %p4788_p9 = pmov %p4787_p8 }
 0x1a2   : > { %p4789_p6 = pmov %p4787_p8 }
 0x1a3   : > { %3804 = vsyncadd (%p4788_p9), [#allocation6], 4294967168 }
 0x1a4   : > { %3806 = dma.done.wait (%p4789_p6), [#allocation9], 640   ;;  %p4790_p0 = pmov %p4789_p6 }
 0x1a6   : > { %3808 = vsyncadd (%p4790_p0), [#allocation9], 4294966656  ;;  %p4791_p12 = pmov %p4790_p0 }
 0x1a7   : > { %p4792_p2 = pmov %p4790_p0 }
 0x1a8   : > { %3810 = dma.done.wait (%p4791_p12), [#allocation12], 3584  }
 0x1a9   : > { %3812 = vsyncadd (%p4792_p2), [#allocation12], 4294963712  ;;  %p4793_p13 = pmov %p4790_p0 }
 0x1aa   : > { %p4794_p5 = pmov %p4790_p0 }
 0x1ab   : > { %3814 = dma.done.wait (%p4793_p13), [#allocation15], 3120  }
 0x1ac   : > { %3816 = vsyncadd (%p4794_p5), [#allocation15], 4294964176  ;;  %p4795_p7 = pmov %p4790_p0 }
 0x1ad   : > { %p4796_p3 = pmov %p4790_p0 }
 0x1ae   : > { %3818 = dma.done.wait (%p4795_p7), [#allocation18], 1072  }
 0x1af   : > { %3820 = vsyncadd (%p4796_p3), [#allocation18], 4294966224  ;;  %p4797_p4 = pmov %p4790_p0 }
 0x1b0   : > { %p4798_p10 = pmov %p4790_p0 }
 0x1b1   : > { %3822 = dma.done.wait (%p4797_p4), [#allocation21], 1040  }
 0x1b2   : > { %3824 = vsyncadd (%p4798_p10), [#allocation21], 4294966256  ;;  %p4799_p1 = pmov %p4790_p0 }
 0x1b3   : > { %p4800_p8 = pmov %p4790_p0 }
 0x1b4   : > { %3826 = dma.done.wait (%p4799_p1), [#allocation24], 1040  }
 0x1b5   : > { %3828 = vsyncadd (%p4800_p8), [#allocation24], 4294966256  ;;  %s4399_s21 = sand.u32 1, %s3851_s25  }
 0x1b6   : > { %s2606_s28 = sshll.u32 %s4399_s21, 6  ;;  %s683_s0 = scalar_lea.sflag [#allocation27], %s4399_s21 }
 0x1b7   : > { %s4403_s18 = scalar_lea.vmem [#allocation26], %s2606_s28 }
 0x1b8   : > { %3830 = dma.done.wait (%p4309_p11), %s683_s0, 1024  }
 0x1b9   : > { %3832 = vsyncadd (%p4309_p11), %s683_s0, 4294966272  ;;  %s2607_s14 = sshll.u32 %s4399_s21, 2  ;;  %p4801_p9 = scmp.ne.s32.totalorder %s4786_s2, 0 }
 0x1ba   : > { %s4410_s1 = scalar_lea.vmem [#allocation28], %s2607_s14  ;;  %v3136_v0 = vld [vmem:[#allocation13 + $0x4] ss:$12 sps:$4 sm:$0xff] (!%p4801_p9)   ;;  %v3138_v1 = vld [vmem:[#allocation13] ss:$12 sps:$4 sm:$0xff] (!%p4801_p9)   ;;  %v3879_v2 = vmov (!%p4801_p9), 0.0  }
 0x1bb   : > { %741 = sbr.rel (%p4801_p9) target bundleno = 2042 (0x7fa), region = 136  ;;  %2796 = vmatprep.subr.bf16.mxu1 (!%p4801_p9), %v3879_v2  ;;  %v3880_v3 = vmov (!%p4801_p9), 0   ;;  %922 = vmatprep.subr.bf16.mxu0 (!%p4801_p9), %v3136_v0  ;;  %v3139_v4 = vld [vmem:[#allocation13 + $0x1c] ss:$12 sps:$4 sm:$0xff] (!%p4801_p9)   ;;  %vm3881_vm0 = vmmov (!%p4801_p9), 0   ;;  %v742_v23 = vld [vmem:[#allocation5] sm:$0xff] (!%p4801_p9) }
 0x1bc   : > { %954 = vmatprep.mubr.bf16.mxu0 (!%p4801_p9), %v3880_v3  ;;  %2812 = vmatprep.mubr.msk.bf16.mxu1 (!%p4801_p9), %vm3881_vm0, %v3879_v2  ;;  %v3141_v5 = vld [vmem:[#allocation13 + $0x18] ss:$12 sps:$4 sm:$0xff] (!%p4801_p9)   ;;  %v3142_v6 = vld [vmem:[#allocation13 + $0x34] ss:$12 sps:$4 sm:$0xff] (!%p4801_p9)   ;;  %v3144_v7 = vld [vmem:[#allocation13 + $0x30] ss:$12 sps:$4 sm:$0xff] (!%p4801_p9)   ;;  %v744_v26 = vpack.c.bf16 (!%p4801_p9), %v742_v23, %v742_v23 }
 0x1bd   : > { %923 = vmatpush1.bf16.msra.mxu0 (!%p4801_p9), %v3138_v1  ;;  %3135 = vset.pattern.permute.xlu0 (!%p4801_p9), %v3880_v3  ;;  %v3145_v8 = vld [vmem:[#allocation13 + $0x4c] ss:$12 sps:$4 sm:$0xff] (!%p4801_p9)   ;;  %v3156_v9 = vld [vmem:[#allocation13 + $0x8] ss:$12 sps:$4 sm:$0xff] (!%p4801_p9)   ;;  %v3148_v11 = vld [vmem:[#allocation13 + $0x64] ss:$12 sps:$4 sm:$0xff] (!%p4801_p9)  }
 0x1be   : > { %924 = vmatprep.subr.bf16.mxu0 (!%p4801_p9), %v3139_v4  ;;  %3134 = vset.pattern.permute.xlu1 (!%p4801_p9), %v3880_v3  ;;  %v3147_v10 = vld [vmem:[#allocation13 + $0x48] ss:$12 sps:$4 sm:$0xff] (!%p4801_p9)   ;;  %v3160_v12 = vld [vmem:[#allocation13 + $0x20] ss:$12 sps:$4 sm:$0xff] (!%p4801_p9)   ;;  %v3162_v14 = vld [vmem:[#allocation13 + $0x38] ss:$12 sps:$4 sm:$0xff] (!%p4801_p9)  }
 0x1bf   : > { %2797 = vmatpush3.bf16.msra.mxu1 (!%p4801_p9), %v3156_v9  ;;  %v3150_v13 = vld [vmem:[#allocation13 + $0x60] ss:$12 sps:$4 sm:$0xff] (!%p4801_p9)   ;;  %v3151_v15 = vld [vmem:[#allocation13 + $0x7c] ss:$12 sps:$4 sm:$0xff] (!%p4801_p9)   ;;  %v3153_v16 = vld [vmem:[#allocation13 + $0x78] ss:$12 sps:$4 sm:$0xff] (!%p4801_p9)  }
 0x1c0   : > { %2798 = vmatprep.subr.bf16.mxu1 (!%p4801_p9), %v3879_v2  ;;  %v3166_v17 = vld [vmem:[#allocation13 + $0x50] ss:$12 sps:$4 sm:$0xff] (!%p4801_p9)   ;;  %v3154_v18 = vld [vmem:[#allocation13 + $0x94] ss:$12 sps:$4 sm:$0xff] (!%p4801_p9)   ;;  %v3158_v21 = vld [vmem:[#allocation13 + $0xac] ss:$12 sps:$4 sm:$0xff] (!%p4801_p9)  }
 0x1c1   : > { %925 = vmatpush1.bf16.msra.mxu0 (!%p4801_p9), %v3141_v5  ;;  %v3157_v19 = vld [vmem:[#allocation13 + $0x90] ss:$12 sps:$4 sm:$0xff] (!%p4801_p9)   ;;  %v3170_v20 = vld [vmem:[#allocation13 + $0x68] ss:$12 sps:$4 sm:$0xff] (!%p4801_p9)   ;;  %v3174_v24 = vld [vmem:[#allocation13 + $0x80] ss:$12 sps:$4 sm:$0xff] (!%p4801_p9)  }
 0x1c2   : > { %926 = vmatprep.subr.bf16.mxu0 %v3142_v6  ;;  %v3161_v22 = vld [vmem:[#allocation13 + $0xa8] ss:$12 sps:$4 sm:$0xff]   ;;  %v3165_v25 = vld [vmem:[#allocation14 + $0x4] ss:$12 sps:$4 sm:$0xff]   ;;  %v3163_v27 = vld [vmem:[#allocation14] ss:$12 sps:$4 sm:$0xff]  }
 0x1c3   : > { %2799 = vmatpush3.bf16.msra.mxu1 %v3160_v12  ;;  %v3178_v28 = vld [vmem:[#allocation13 + $0x98] ss:$12 sps:$4 sm:$0xff]   ;;  %v3169_v29 = vld [vmem:[#allocation14 + $0x1c] ss:$12 sps:$4 sm:$0xff]   ;;  %v3173_v32 = vld [vmem:[#allocation14 + $0x34] ss:$12 sps:$4 sm:$0xff]  }
 0x1c4   : > { %2800 = vmatprep.subr.bf16.mxu1 %v3879_v2  ;;  %v3167_v30 = vld [vmem:[#allocation14 + $0x18] ss:$12 sps:$4 sm:$0xff]   ;;  %v3182_v31 = vld [vmem:[#allocation13 + $0xb0] ss:$12 sps:$4 sm:$0xff]   ;;  %v3189_v35 = vld [vmem:[#allocation14 + $0x8] ss:$12 sps:$4 sm:$0xff]  }
 0x1c5   : > { %927 = vmatpush1.bf16.msra.mxu0 %v3144_v7  ;;  %v3171_v33 = vld [vmem:[#allocation14 + $0x30] ss:$12 sps:$4 sm:$0xff]   ;;  %v3177_v34 = vld [vmem:[#allocation14 + $0x4c] ss:$12 sps:$4 sm:$0xff]   ;;  %v3175_v36 = vld [vmem:[#allocation14 + $0x48] ss:$12 sps:$4 sm:$0xff]  }
 0x1c6   : > { %928 = vmatprep.subr.bf16.mxu0 %v3145_v8  ;;  %v3193_v37 = vld [vmem:[#allocation14 + $0x20] ss:$12 sps:$4 sm:$0xff]   ;;  %v3181_v38 = vld [vmem:[#allocation14 + $0x64] ss:$12 sps:$4 sm:$0xff]   ;;  %v3185_v41 = vld [vmem:[#allocation14 + $0x7c] ss:$12 sps:$4 sm:$0xff]  }
 0x1c7   : > { %2801 = vmatpush3.bf16.msra.mxu1 %v3162_v14  ;;  %v3179_v39 = vld [vmem:[#allocation14 + $0x60] ss:$12 sps:$4 sm:$0xff]   ;;  %v3194_v40 = vld [vmem:[#allocation14 + $0x38] ss:$12 sps:$4 sm:$0xff]   ;;  %v3195_v43 = vld [vmem:[#allocation14 + $0x50] ss:$12 sps:$4 sm:$0xff]  }
 0x1c8   : > { %2802 = vmatprep.subr.bf16.mxu1 %v3879_v2  ;;  %v3183_v42 = vld [vmem:[#allocation14 + $0x78] ss:$12 sps:$4 sm:$0xff]   ;;  %v3188_v44 = vld [vmem:[#allocation14 + $0x94] ss:$12 sps:$4 sm:$0xff]   ;;  %v3186_v45 = vld [vmem:[#allocation14 + $0x90] ss:$12 sps:$4 sm:$0xff]  }
 0x1c9   : > { %929 = vmatpush1.bf16.msra.mxu0 %v3147_v10  ;;  %v3196_v46 = vld [vmem:[#allocation14 + $0x68] ss:$12 sps:$4 sm:$0xff]   ;;  %v3192_v47 = vld [vmem:[#allocation14 + $0xac] ss:$12 sps:$4 sm:$0xff]   ;;  %v3199_v53 = vld [vmem:[#allocation14 + $0xb0] ss:$12 sps:$4 sm:$0xff]  }
 0x1ca   : > { %930 = vmatprep.subr.bf16.mxu0 %v3148_v11  ;;  %v3190_v48 = vld [vmem:[#allocation14 + $0xa8] ss:$12 sps:$4 sm:$0xff]   ;;  %v4435_v49 = vld [vmem:[#allocation8] sm:$0xff]  ;;  %v3197_v50 = vld [vmem:[#allocation14 + $0x80] ss:$12 sps:$4 sm:$0xff]   ;;  %vm1584_vm1 = vcmask 1041409  }
 0x1cb   : > { %2803 = vmatpush3.bf16.msra.mxu1 %v3166_v17  ;;  %v1003_v51 = vpack.c.bf16 %v4435_v49, %v4435_v49  ;;  %v3198_v52 = vld [vmem:[#allocation14 + $0x98] ss:$12 sps:$4 sm:$0xff]   ;;  %v3200_v54 = vld [vmem:[#allocation19] sm:$0xff]   ;;  %v3201_v55 = vld [vmem:[#allocation19 + $0x8] sm:$0xff]   ;;  %vm1586_vm2 = vcmask 1042434   ;;  %vm1588_vm3 = vcmask 1043459  }
 0x1cc   : > { %2804 = vmatprep.subr.bf16.mxu1 %v3879_v2  ;;  %v3202_v56 = vld [vmem:[#allocation19 + $0x10] sm:$0xff]   ;;  %v3203_v57 = vld [vmem:[#allocation19 + $0x18] sm:$0xff]   ;;  %v3204_v58 = vld [vmem:[#allocation19 + $0x20] sm:$0xff]   ;;  %vm1590_vm4 = vcmask 1044484   ;;  %vm1592_vm5 = vcmask 1045509   ;;  %vm1594_vm6 = vcmask 1046534  }
 0x1cd   : > { %931 = vmatpush1.bf16.msra.mxu0 %v3150_v13  ;;  %v3205_v59 = vld [vmem:[#allocation19 + $0x28] sm:$0xff]   ;;  %v3206_v60 = vld [vmem:[#allocation19 + $0x30] sm:$0xff]   ;;  %v3207_v61 = vld [vmem:[#allocation19 + $0x38] sm:$0xff]   ;;  %vm1596_vm7 = vcmask 1047559   ;;  %vm1599_vm8 = vcmask 64512   ;;  %vm2157_vm9 = vcmask 7168  }
 0x1ce   : > { %932 = vmatprep.subr.bf16.mxu0 %v3151_v15  ;;  %v1036_v6 = vld [vmem:[#allocation17] sm:$0x7]  ;;  %v777_v7 = vld [vmem:[#allocation16] sm:$0x7]  ;;  %2159 = vst.msk [vmem:[#allocation4] sm:$0xff] %vm2157_vm9, %v3879_v2 }
 0x1cf   : > { %2805 = vmatpush3.bf16.msra.mxu1 %v3170_v20 }
 0x1d0   : > { %2806 = vmatprep.subr.bf16.mxu1 %v3879_v2 }
 0x1d1   : > { %933 = vmatpush1.bf16.msra.mxu0 %v3153_v16 }
 0x1d2   : > { %934 = vmatprep.subr.bf16.mxu0 %v3154_v18 }
 0x1d3   : > { %2807 = vmatpush3.bf16.msra.mxu1 %v3174_v24 }
 0x1d4   : > { %2808 = vmatprep.subr.bf16.mxu1 %v3879_v2 }
 0x1d5   : > { %935 = vmatpush1.bf16.msra.mxu0 %v3157_v19 }
 0x1d6   : > { %936 = vmatprep.subr.bf16.mxu0 %v3158_v21 }
 0x1d7   : > { %2809 = vmatpush3.bf16.msra.mxu1 %v3178_v28 }
 0x1d8   : > { %2810 = vmatprep.subr.bf16.mxu1 %v3879_v2 }
 0x1d9   : > { %937 = vmatpush1.bf16.msra.mxu0 %v3161_v22 }
 0x1da   : > { %1181 = vmatprep.subr.bf16.mxu0 %v3165_v25 }
 0x1db   : > { %2811 = vmatpush3.bf16.msra.mxu1 %v3182_v31 }
 0x1dc   : > { %955 = vmatmul.mubr.bf16.vlgmr.msra.gmra.mrb[0].mxu0 %v744_v26  ;;  %2816 = vmatprep.subr.bf16.mxu1 %v3879_v2 }
 0x1dd   : > { %1182 = vmatpush1.bf16.msra.mxu0 %v3163_v27  ;;  %1213 = vmatprep.mubr.bf16.mxu0 %v3880_v3  ;;  %v779_v3 = vlaneseq }
 0x1de   : > { %1183 = vmatprep.subr.bf16.mxu0 %v3169_v29  ;;  %2813 = vmatmul.mubr.bf16.vlgmr.msra.gmra.mrb[0].mxu1 %v744_v26 }
 0x1df   : > { %2817 = vmatpush3.bf16.msra.mxu1 %v3189_v35  ;;  %2832 = vmatprep.mubr.msk.bf16.mxu1 %vm3881_vm0, %v3879_v2  ;;  %v4457_v4 = vshrl.u32 %v779_v3, 7 }
 0x1e0   : > { %2818 = vmatprep.subr.bf16.mxu1 %v3879_v2 }
 0x1e1   : > { %1184 = vmatpush1.bf16.msra.mxu0 %v3167_v30  ;;  %v4460_v5 = vsub.s32 0, %v4457_v4  ;;  %v4463_v8 = vsub.s32 1, %v4457_v4  ;;  %v4470_v29 = vsub.s32 2, %v4457_v4 }
 0x1e2   : > { %1185 = vmatprep.subr.bf16.mxu0 %v3173_v32 }
 0x1e3   : > { %2819 = vmatpush3.bf16.msra.mxu1 %v3193_v37  ;;  %v782_v9 = vrot.slane %v777_v7, %v4460_v5  ;;  %v1041_v10 = vrot.slane %v1036_v6, %v4460_v5  ;;  %v786_v11 = vrot.slane %v777_v7, %v4463_v8  ;;  %v1045_v12 = vrot.slane %v1036_v6, %v4463_v8 }
 0x1e4   : > { %2820 = vmatprep.subr.bf16.mxu1 %v3879_v2  ;;  %v1049_v30 = vrot.slane %v1036_v6, %v4470_v29  ;;  %v790_v32 = vrot.slane %v777_v7, %v4470_v29  ;;  %v2736_v7 = vld [vmem:[#allocation11 + $0x8] sm:$0xff]  }
 0x1e5   : > { %1186 = vmatpush1.bf16.msra.mxu0 %v3171_v33  ;;  %v2916_v13 = vadd.f32 %v1041_v10, %v782_v9  ;;  %v2918_v15 = vadd.f32 %v1045_v12, %v786_v11  ;;  %v2737_v9 = vld [vmem:[#allocation11 + $0x10] sm:$0xff]  }
 0x1e6   : > { %1187 = vmatprep.subr.bf16.mxu0 %v3177_v34 }
 0x1e7   : > { %2821 = vmatpush3.bf16.msra.mxu1 %v3194_v40 }
 0x1e8   : > { %2822 = vmatprep.subr.bf16.mxu1 %v3879_v2 }
 0x1e9   : > { %1188 = vmatpush1.bf16.msra.mxu0 %v3175_v36 }
 0x1ea   : > { %1189 = vmatprep.subr.bf16.mxu0 %v3181_v38 }
 0x1eb   : > { %2823 = vmatpush3.bf16.msra.mxu1 %v3195_v43 }
 0x1ec   : > { %2824 = vmatprep.subr.bf16.mxu1 %v3879_v2 }
 0x1ed   : > { %1190 = vmatpush1.bf16.msra.mxu0 %v3179_v39 }
 0x1ee   : > { %1191 = vmatprep.subr.bf16.mxu0 %v3185_v41 }
 0x1ef   : > { %2825 = vmatpush3.bf16.msra.mxu1 %v3196_v46 }
 0x1f0   : > { %2826 = vmatprep.subr.bf16.mxu1 %v3879_v2 }
 0x1f1   : > { %1192 = vmatpush1.bf16.msra.mxu0 %v3183_v42 }
 0x1f2   : > { %1193 = vmatprep.subr.bf16.mxu0 %v3188_v44 }
 0x1f3   : > { %2827 = vmatpush3.bf16.msra.mxu1 %v3197_v50  ;;  %v3211_v50 = vld [vmem:[#allocation22 + $0x18] sm:$0xff]  }
 0x1f4   : > { %2828 = vmatprep.subr.bf16.mxu1 %v3879_v2 }
 0x1f5   : > { %1194 = vmatpush1.bf16.msra.mxu0 %v3186_v45  ;;  %v3208_v45 = vld [vmem:[#allocation22] sm:$0xff]  }
 0x1f6   : > { %1195 = vmatprep.subr.bf16.mxu0 %v3192_v47  ;;  %v3209_v47 = vld [vmem:[#allocation22 + $0x8] sm:$0xff]  }
 0x1f7   : > { %2829 = vmatpush3.bf16.msra.mxu1 %v3198_v52  ;;  %v3214_v52 = vld [vmem:[#allocation22 + $0x30] sm:$0xff]  }
 0x1f8   : > { %2830 = vmatprep.subr.bf16.mxu1 %v3879_v2 }
 0x1f9   : > { %1196 = vmatpush1.bf16.msra.mxu0 %v3190_v48  ;;  %v3210_v48 = vld [vmem:[#allocation22 + $0x10] sm:$0xff]  }
 0x1fa   : > { %2836 = vmatprep.subr.bf16.mxu0 %v3879_v2 }
 0x1fb   : > { %2831 = vmatpush3.bf16.msra.mxu1 %v3199_v53  ;;  %v3215_v53 = vld [vmem:[#allocation22 + $0x38] sm:$0xff]  }
 0x1fc   : > { %1214 = vmatmul.mubr.bf16.vlgmr.msra.gmra.mrb[0].mxu0 %v1003_v51  ;;  %2856 = vmatprep.subr.bf16.mxu1 %v3879_v2 }
 0x1fd   : > { %2852 = vmatprep.mubr.msk.bf16.mxu0 %vm3881_vm0, %v3879_v2  ;;  %2837 = vmatpush3.bf16.msra.mxu0 %v3200_v54  ;;  %v3882_v54 = vmov 1966171168  }
 0x1fe   : > { %2833 = vmatmul.mubr.bf16.vlgmr.msra.gmra.mrb[4].mxu1 %v1003_v51  ;;  %2838 = vmatprep.subr.bf16.mxu0 %v3879_v2  ;;  %v3213_v51 = vld [vmem:[#allocation22 + $0x28] sm:$0xff]  }
 0x1ff   : > { %2872 = vmatprep.mubr.msk.bf16.mxu1 %vm3881_vm0, %v3879_v2 }
 0x201   : > { %2839 = vmatpush3.bf16.msra.mxu0 %v3201_v55  ;;  %v1392_v55 = vunpack.c.l.s4 %v3882_v54 }
 0x202   : > { %2840 = vmatprep.subr.bf16.mxu0 %v3879_v2 }
 0x205   : > { %2841 = vmatpush3.bf16.msra.mxu0 %v3202_v56  ;;  %v1393_v56 = vunpack.c.0.s8 %v1392_v55 }
 0x206   : > { %2842 = vmatprep.subr.bf16.mxu0 %v3879_v2 }
 0x209   : > { %2843 = vmatpush3.bf16.msra.mxu0 %v3203_v57  ;;  %v1396_v57 = vsub.s32 %v1393_v56, %v4457_v4 }
 0x20a   : > { %2844 = vmatprep.subr.bf16.mxu0 %v3879_v2 }
 0x20d   : > { %2845 = vmatpush3.bf16.msra.mxu0 %v3204_v58 }
 0x20e   : > { %2846 = vmatprep.subr.bf16.mxu0 %v3879_v2 }
 0x211   : > { %2847 = vmatpush3.bf16.msra.mxu0 %v3205_v59 }
 0x212   : > { %2848 = vmatprep.subr.bf16.mxu0 %v3879_v2 }
 0x215   : > { %2849 = vmatpush3.bf16.msra.mxu0 %v3206_v60 }
 0x216   : > { %2850 = vmatprep.subr.bf16.mxu0 %v3879_v2 }
 0x219   : > { %2851 = vmatpush3.bf16.msra.mxu0 %v3207_v61  ;;  %v2705_v61 = vld [vmem:[#allocation11] sm:$0xff]  }
 0x21a   : > { %2876 = vmatprep.subr.bf16.mxu0 %v3879_v2  ;;  %v2706_v11 = vunpack.c.l.bf16 %v2705_v61 }
 0x2b1   : > { %v997_v62 = vpop.f32.mrb[0].mxu1 }
 0x2b2   : > { %v2814_v63 = vpop.f32.mrb[1].mxu1  ;;  %v998_v36 = vadd.f32 %v997_v62, %v790_v32 }
 0x2b3   : > { %v1000_v0 = vpop.f32.mrb[2].mxu1 }
 0x2b4   : > { %v2815_v1 = vpop.f32.mrb[3].mxu1 }
 0x2cf   : > { %v1215_v14 = vpop.f32.mrb[0].mxu0 }
 0x2d0   : > { %v2917_v16 = vadd.f32 %v2916_v13, %v1215_v14  ;;  %v1217_v17 = vpop.f32.mrb[1].mxu0 }
 0x2d1   : > { %v1219_v18 = vpop.f32.mrb[2].mxu0  ;;  %v2919_v21 = vadd.f32 %v2918_v15, %v1217_v17  ;;  %v1256_v23 = vpop.f32.mrb[4].mxu1  ;;  %v2710_v17 = vunpack.c.l.bf16 %v2736_v7 }
 0x2d2   : > { %v2657_v19 = vmul.f32 -1.442695, %v2917_v16  ;;  %v1220_v20 = vpop.f32.mrb[3].mxu0  ;;  %v2834_v24 = vpop.f32.mrb[5].mxu1  ;;  %v1257_v34 = vadd.f32 %v1256_v23, %v1049_v30  ;;  %v2707_v16 = vunpack.c.h.bf16 %v2705_v61  ;;  %v2714_v18 = vunpack.c.l.bf16 %v2737_v9 }
 0x2d3   : > { %v2658_v22 = vmul.f32 -1.442695, %v2919_v21  ;;  %v1259_v25 = vpop.f32.mrb[6].mxu1 }
 0x2d4   : > { %3224 = vpow2.f32 %v2657_v19  ;;  %v2835_v26 = vpop.f32.mrb[7].mxu1 }
 0x2d5   : > { %3226 = vpow2.f32 %v2658_v22  ;;  %v2711_v22 = vunpack.c.h.bf16 %v2736_v7 }
 0x2de   : > { %v3225_v27 = vpop.eup %3224 }
 0x2df   : > { %v1266_v28 = vadd.f32 1.0, %v3225_v27  ;;  %v3227_v31 = vpop.eup %3226 }
 0x2e0   : > { %v1273_v33 = vadd.f32 1.0, %v3227_v31 }
 0x2e1   : > { %3228 = vrcp.f32 %v1266_v28  ;;  %v2738_v28 = vld [vmem:[#allocation11 + $0x18] sm:$0xff]  }
 0x2e2   : > { %3230 = vrcp.f32 %v1273_v33 }
 0x2eb   : > { %v3229_v35 = vpop.eup %3228 }
 0x2ec   : > { %v1276_v37 = vmul.f32 %v3229_v35, %v1257_v34  ;;  %v3231_v39 = vpop.eup %3230  ;;  %v2715_v34 = vunpack.c.h.bf16 %v2737_v9 }
 0x2ed   : > { %v1279_v40 = vsub.f32 1.0, %v3231_v39  ;;  %v1281_v43 = vmul.f32 %v3231_v39, %v4435_v49  ;;  %v3212_v49 = vld [vmem:[#allocation22 + $0x20] sm:$0xff]  }
 0x2ee   : > { %v1277_v38 = vadd.f32 %v1276_v37, %v998_v36  ;;  %v2718_v37 = vunpack.c.l.bf16 %v2738_v28 }
 0x2f0   : > { %3232 = vtanh.f32 %v1277_v38 }
 0x2fa   : > { %v3233_v41 = vpop.eup %3232 }
 0x2fb   : > { %v1280_v42 = vmul.f32 %v3233_v41, %v1279_v40 }
 0x2fd   : > { %v1282_v44 = vadd.f32 %v1281_v43, %v1280_v42  ;;  %v2719_v42 = vunpack.c.h.bf16 %v2738_v28 }
 0x2ff   : > { %1283 = vst [vmem:[#allocation29] sm:$0xff] %v1282_v44  ;;  %v1284_v46 = vpack.c.bf16 %v1282_v44, %v1282_v44  ;;  %v2667_v44 = vld [vmem:[#allocation20] ss:$0 sm:$0xff] }
 0x301   : > { %2853 = vmatmul.mubr.bf16.vlgmr.msra.gmra.mrb[4].mxu0 %v1284_v46 }
 0x302   : > { %2877 = vmatpush3.bf16.msra.mxu0 %v3208_v45  ;;  %2892 = vmatprep.mubr.msk.bf16.mxu0 %vm3881_vm0, %v3879_v2 }
 0x303   : > { %2878 = vmatprep.subr.bf16.mxu0 %v3879_v2 }
 0x306   : > { %2879 = vmatpush3.bf16.msra.mxu0 %v3209_v47 }
 0x307   : > { %2880 = vmatprep.subr.bf16.mxu0 %v3879_v2 }
 0x30a   : > { %2881 = vmatpush3.bf16.msra.mxu0 %v3210_v48 }
 0x30b   : > { %2882 = vmatprep.subr.bf16.mxu0 %v3879_v2 }
 0x30e   : > { %2883 = vmatpush3.bf16.msra.mxu0 %v3211_v50 }
 0x30f   : > { %2884 = vmatprep.subr.bf16.mxu0 %v3879_v2 }
 0x312   : > { %2885 = vmatpush3.bf16.msra.mxu0 %v3212_v49 }
 0x313   : > { %2886 = vmatprep.subr.bf16.mxu0 %v3879_v2 }
 0x316   : > { %2887 = vmatpush3.bf16.msra.mxu0 %v3213_v51 }
 0x317   : > { %2888 = vmatprep.subr.bf16.mxu0 %v3879_v2 }
 0x31a   : > { %2889 = vmatpush3.bf16.msra.mxu0 %v3214_v52 }
 0x31b   : > { %2890 = vmatprep.subr.bf16.mxu0 %v3879_v2 }
 0x31e   : > { %2891 = vmatpush3.bf16.msra.mxu0 %v3215_v53 }
 0x321   : > { %2893 = vmatmul.mubr.bf16.vlgmr.msra.gmra.mrb[8].mxu0 %v1284_v46 }
 0x3d4   : > { %v1383_v58 = vpop.f32.mrb[4].mxu0 }
 0x3d5   : > { %v1390_v59 = vcombine.high %v1383_v58, %v1383_v58  ;;  %v1397_v60 = vrot.slane %v1383_v58, %v1396_v57  ;;  %v2854_v62 = vpop.f32.mrb[5].mxu0 }
 0x3d6   : > { %v1386_v63 = vpop.f32.mrb[6].mxu0 }
 0x3d7   : > { %v1404_v0 = vrot.slane %v1390_v59, %v1396_v57  ;;  %v1405_v1 = vcombine.high %v1397_v60, %v1397_v60  ;;  %v1413_v6 = vrot.slane %v1397_v60, %v1396_v57  ;;  %v2855_v10 = vpop.f32.mrb[7].mxu0 }
 0x3d9   : > { %v1406_v12 = vcombine.high %v1404_v0, %v1404_v0  ;;  %v1420_v13 = vrot.slane %v1404_v0, %v1396_v57  ;;  %v1427_v14 = vrot.slane %v1405_v1, %v1396_v57  ;;  %v1435_v15 = vcombine.high %v1413_v6, %v1413_v6 }
 0x3da   : > { %v1458_v19 = vrot.slane %v1413_v6, %v4460_v5  ;;  %v1551_v6 = vand.u32 127, %v779_v3 }
 0x3db   : > { %v1434_v20 = vrot.slane %v1406_v12, %v1396_v57  ;;  %v1437_v21 = vcombine.high %v1427_v14, %v1427_v14  ;;  %v1462_v23 = vrot.slane %v1427_v14, %v4460_v5  ;;  %v1436_v24 = vcombine.high %v1420_v13, %v1420_v13 }
 0x3dc   : > { %v1466_v25 = vrot.slane %v1435_v15, %v4460_v5  ;;  %v1474_v26 = vrot.slane %v1420_v13, %v4460_v5  ;;  %v1495_v27 = vadd.f32 %v2706_v11, %v1458_v19  ;;  %v4497_v9 = vsub.s32 %v1551_v6, %v4457_v4 }
 0x3dd   : > { %v1470_v30 = vrot.slane %v1437_v21, %v4460_v5  ;;  %v1496_v31 = vadd.f32 %v2707_v16, %v1462_v23  ;;  %v1438_v33 = vcombine.high %v1434_v20, %v1434_v20  ;;  %v1478_v35 = vrot.slane %v1434_v20, %v4460_v5 }
 0x3de   : > { %v1497_v32 = vadd.f32 %v2710_v17, %v1466_v25  ;;  %3234 = vtanh.f32 %v1495_v27  ;;  %v1482_v38 = vrot.slane %v1436_v24, %v4460_v5  ;;  %v1499_v39 = vadd.f32 %v2714_v18, %v1474_v26 }
 0x3df   : > { %v1498_v36 = vadd.f32 %v2711_v22, %v1470_v30  ;;  %3236 = vtanh.f32 %v1496_v31  ;;  %v1486_v40 = vrot.slane %v1438_v33, %v4460_v5  ;;  %v1500_v41 = vadd.f32 %v2715_v34, %v1478_v35 }
 0x3e0   : > { %3238 = vtanh.f32 %v1497_v32  ;;  %v1501_v43 = vadd.f32 %v2718_v37, %v1482_v38  ;;  %v1618_v33 = vsub.s32 3, %v4457_v4  ;;  %v1622_v38 = vsub.s32 4, %v4457_v4 }
 0x3e1   : > { %3240 = vtanh.f32 %v1498_v36  ;;  %v1502_v45 = vadd.f32 %v2719_v42, %v1486_v40 }
 0x3e2   : > { %3242 = vtanh.f32 %v1499_v39 }
 0x3e3   : > { %3244 = vtanh.f32 %v1500_v41 }
 0x3e4   : > { %3246 = vtanh.f32 %v1501_v43 }
 0x3e5   : > { %3248 = vtanh.f32 %v1502_v45  ;;  %v1626_v45 = vsub.s32 5, %v4457_v4 }
 0x3e8   : > { %v3235_v46 = vpop.eup %3234 }
 0x3e9   : > { %v1518_v47 = vmul.f32 %v3235_v46, %v2667_v44  ;;  %v3237_v48 = vpop.eup %3236 }
 0x3ea   : > { %v3239_v50 = vpop.eup %3238  ;;  %v1519_v52 = vmul.f32 %v3237_v48, %v2667_v44 }
 0x3eb   : > { %1526 = vadd.xlane.f32.xlu0 %v1518_v47  ;;  %v1520_v49 = vmul.f32 %v3239_v50, %v2667_v44  ;;  %v3241_v51 = vpop.eup %3240  ;;  %v1630_v50 = vsub.s32 6, %v4457_v4 }
 0x3ec   : > { %v3243_v53 = vpop.eup %3242  ;;  %v1521_v54 = vmul.f32 %v3241_v51, %v2667_v44 }
 0x3ed   : > { %1530 = vadd.xlane.f32.xlu1 %v1520_v49  ;;  %v3245_v55 = vpop.eup %3244  ;;  %v1522_v56 = vmul.f32 %v3243_v53, %v2667_v44  ;;  %v1634_v53 = vsub.s32 7, %v4457_v4  ;;  %v3220_v4 = vld [vmem:[#allocation23 + $0x20] sm:$0xff]  }
 0x3ee   : > { %v3247_v57 = vpop.eup %3246  ;;  %v1523_v59 = vmul.f32 %v3245_v55, %v2667_v44 }
 0x3ef   : > { %1528 = vadd.xlane.f32.xlu0 %v1519_v52  ;;  %v3249_v60 = vpop.eup %3248  ;;  %v1524_v62 = vmul.f32 %v3247_v57, %v2667_v44 }
 0x3f0   : > { %v1525_v1 = vmul.f32 %v3249_v60, %v2667_v44 }
 0x3f1   : > { %1532 = vadd.xlane.f32.xlu1 %v1521_v54 }
 0x3f3   : > { %1534 = vadd.xlane.f32.xlu0 %v1522_v56 }
 0x3f4   : > { %v4493_v58 = vpop.f32.mrb[8].mxu0 }
 0x3f5   : > { %v2894_v61 = vpop.f32.mrb[9].mxu0  ;;  %1536 = vadd.xlane.f32.xlu1 %v1523_v59 }
 0x3f6   : > { %v2143_v63 = vpop.f32.mrb[10].mxu0 }
 0x3f7   : > { %1538 = vadd.xlane.f32.xlu0 %v1524_v62  ;;  %v2895_v0 = vpop.f32.mrb[11].mxu0 }
 0x3f9   : > { %1540 = vadd.xlane.f32.xlu1 %v1525_v1 }
 0x478   : > { %v1527_v7 = vpop.xlane.xlu0 %1526 }
 0x479   : > { %v1555_v12 = vrot.slane %v1527_v7, %v4497_v9 }
 0x47a   : > { %v1531_v10 = vpop.xlane.xlu1 %1530 }
 0x47b   : > { %v1563_v14 = vrot.slane %v1531_v10, %v4497_v9 }
 0x47c   : > { %v1529_v11 = vpop.xlane.xlu0 %1528 }
 0x47d   : > { %v1559_v13 = vrot.slane %v1529_v11, %v4497_v9 }
 0x47e   : > { %v1533_v16 = vpop.xlane.xlu1 %1532 }
 0x47f   : > { %v1585_v15 = vsel %vm1584_vm1, %v1559_v13, %v1555_v12  ;;  %v1567_v17 = vrot.slane %v1533_v16, %v4497_v9 }
 0x480   : > { %v1587_v3 = vsel %vm1586_vm2, %v1563_v14, %v1585_v15  ;;  %v1535_v18 = vpop.xlane.xlu0 %1534 }
 0x481   : > { %v1571_v19 = vrot.slane %v1535_v18, %v4497_v9  ;;  %v1589_v20 = vsel %vm1588_vm3, %v1567_v17, %v1587_v3 }
 0x482   : > { %v1537_v22 = vpop.xlane.xlu1 %1536 }
 0x483   : > { %v1591_v21 = vsel %vm1590_vm4, %v1571_v19, %v1589_v20  ;;  %v1575_v23 = vrot.slane %v1537_v22, %v4497_v9 }
 0x484   : > { %v1539_v24 = vpop.xlane.xlu0 %1538 }
 0x485   : > { %v1579_v25 = vrot.slane %v1539_v24, %v4497_v9  ;;  %v1593_v26 = vsel %vm1592_vm5, %v1575_v23, %v1591_v21 }
 0x486   : > { %v1541_v27 = vpop.xlane.xlu1 %1540 }
 0x487   : > { %v1595_v28 = vsel %vm1594_vm6, %v1579_v25, %v1593_v26  ;;  %v1583_v30 = vrot.slane %v1541_v27, %v4497_v9 }
 0x489   : > { %v1597_v31 = vsel %vm1596_vm7, %v1583_v30, %v1595_v28 }
 0x48a   : > { %v1600_v32 = vsel %vm1599_vm8, %v1597_v31, -inf }
 0x48b   : > { %1601 = vmax.xlane.f32.xlu0 %v1600_v32 }
 0x518   : > { %v1602_v34 = vpop.xlane.xlu0 %1601 }
 0x519   : > { %v1607_v35 = vrot.slane %v1602_v34, %v4460_v5  ;;  %v1611_v36 = vrot.slane %v1602_v34, %v4463_v8  ;;  %v1615_v37 = vrot.slane %v1602_v34, %v4470_v29  ;;  %v1619_v39 = vrot.slane %v1602_v34, %v1618_v33 }
 0x51a   : > { %v1623_v46 = vrot.slane %v1602_v34, %v1622_v38  ;;  %v1627_v49 = vrot.slane %v1602_v34, %v1626_v45  ;;  %v1631_v54 = vrot.slane %v1602_v34, %v1630_v50  ;;  %v1635_v60 = vrot.slane %v1602_v34, %v1634_v53 }
 0x51b   : > { %v1644_v40 = vsub.f32 %v1527_v7, %v1607_v35  ;;  %v1645_v41 = vsub.f32 %v1529_v11, %v1611_v36  ;;  %v1646_v42 = vsub.f32 %v1531_v10, %v1615_v37  ;;  %v1647_v47 = vsub.f32 %v1533_v16, %v1619_v39 }
 0x51c   : > { %v1648_v51 = vsub.f32 %v1535_v18, %v1623_v46  ;;  %v1649_v55 = vsub.f32 %v1537_v22, %v1627_v49  ;;  %v1650_v61 = vsub.f32 %v1539_v24, %v1631_v54  ;;  %v1651_v0 = vsub.f32 %v1541_v27, %v1635_v60  ;;  %v2721_v60 = vld [vmem:[#allocation10] sm:$0xff]  }
 0x51d   : > { %v1652_v43 = vmul.f32 1.442695, %v1644_v40  ;;  %v1654_v44 = vmul.f32 1.442695, %v1645_v41  ;;  %v1656_v48 = vmul.f32 1.442695, %v1646_v42 }
 0x51e   : > { %v1658_v52 = vmul.f32 1.442695, %v1647_v47  ;;  %v1660_v56 = vmul.f32 1.442695, %v1648_v51  ;;  %v1662_v62 = vmul.f32 1.442695, %v1649_v55 }
 0x51f   : > { %3250 = vpow2.f32 %v1652_v43  ;;  %v1664_v1 = vmul.f32 1.442695, %v1650_v61  ;;  %v1666_v7 = vmul.f32 1.442695, %v1651_v0  ;;  %v3216_v55 = vld [vmem:[#allocation23] sm:$0xff]  }
 0x520   : > { %3252 = vpow2.f32 %v1654_v44  ;;  %2857 = vmatpush3.bf16.msra.mxu1 %v3216_v55  ;;  %v2739_v0 = vld [vmem:[#allocation10 + $0x8] sm:$0xff]  }
 0x521   : > { %3254 = vpow2.f32 %v1656_v48  ;;  %2858 = vmatprep.subr.bf16.mxu1 %v3879_v2 }
 0x522   : > { %3256 = vpow2.f32 %v1658_v52 }
 0x523   : > { %3258 = vpow2.f32 %v1660_v56 }
 0x524   : > { %3260 = vpow2.f32 %v1662_v62  ;;  %v2723_v62 = vunpack.c.h.bf16 %v2721_v60 }
 0x525   : > { %3262 = vpow2.f32 %v1664_v1 }
 0x526   : > { %3264 = vpow2.f32 %v1666_v7  ;;  %v2726_v7 = vunpack.c.l.bf16 %v2739_v0 }
 0x529   : > { %v3251_v57 = vpop.eup %3250 }
 0x52a   : > { %v3253_v59 = vpop.eup %3252  ;;  %1677 = vperm.xlu1 %3134, %v3251_v57  }
 0x52b   : > { %1680 = vperm.xlu0 %3135, %v3253_v59   ;;  %v3255_v63 = vpop.eup %3254 }
 0x52c   : > { %v3257_v6 = vpop.eup %3256 }
 0x52d   : > { %v3259_v10 = vpop.eup %3258 }
 0x52e   : > { %1683 = vperm.xlu1 %3134, %v3255_v63   ;;  %v3261_v11 = vpop.eup %3260 }
 0x52f   : > { %v3263_v12 = vpop.eup %3262 }
 0x530   : > { %v3265_v13 = vpop.eup %3264 }
 0x532   : > { %1686 = vperm.xlu1 %3134, %v3257_v6  }
 0x536   : > { %1689 = vperm.xlu1 %3134, %v3259_v10  }
 0x53a   : > { %1692 = vperm.xlu1 %3134, %v3261_v11  }
 0x53e   : > { %1695 = vperm.xlu1 %3134, %v3263_v12  }
 0x542   : > { %1698 = vperm.xlu1 %3134, %v3265_v13  }
 0x5a9   : > { %v1678_v14 = vpop.permute.xlu1 %1677 }
 0x5aa   : > { %v1681_v17 = vpop.permute.xlu0 %1680  ;;  %v1703_v20 = vrot.slane %v1678_v14, %v4497_v9  ;;  %v2727_v14 = vunpack.c.h.bf16 %v2739_v0 }
 0x5ab   : > { %v1707_v19 = vrot.slane %v1681_v17, %v4497_v9 }
 0x5ad   : > { %v1684_v15 = vpop.permute.xlu1 %1683  ;;  %v1732_v25 = vsel %vm1584_vm1, %v1707_v19, %v1703_v20 }
 0x5ae   : > { %v1711_v21 = vrot.slane %v1684_v15, %v4497_v9 }
 0x5b0   : > { %v1733_v27 = vsel %vm1586_vm2, %v1711_v21, %v1732_v25 }
 0x5b1   : > { %v1687_v16 = vpop.permute.xlu1 %1686 }
 0x5b2   : > { %v1715_v22 = vrot.slane %v1687_v16, %v4497_v9 }
 0x5b4   : > { %v1734_v30 = vsel %vm1588_vm3, %v1715_v22, %v1733_v27 }
 0x5b5   : > { %v1690_v3 = vpop.permute.xlu1 %1689 }
 0x5b6   : > { %v1719_v23 = vrot.slane %v1690_v3, %v4497_v9  ;;  %v2740_v3 = vld [vmem:[#allocation10 + $0x10] sm:$0xff]  }
 0x5b7   : > { %v2730_v22 = vunpack.c.l.bf16 %v2740_v3  ;;  %v2731_v27 = vunpack.c.h.bf16 %v2740_v3 }
 0x5b8   : > { %v1735_v31 = vsel %vm1590_vm4, %v1719_v23, %v1734_v30 }
 0x5b9   : > { %v1693_v18 = vpop.permute.xlu1 %1692 }
 0x5ba   : > { %v1723_v26 = vrot.slane %v1693_v18, %v4497_v9 }
 0x5bc   : > { %v1736_v34 = vsel %vm1592_vm5, %v1723_v26, %v1735_v31 }
 0x5bd   : > { %v1696_v24 = vpop.permute.xlu1 %1695 }
 0x5be   : > { %v1727_v28 = vrot.slane %v1696_v24, %v4497_v9 }
 0x5c0   : > { %v1737_v36 = vsel %vm1594_vm6, %v1727_v28, %v1736_v34 }
 0x5c1   : > { %v1699_v32 = vpop.permute.xlu1 %1698 }
 0x5c2   : > { %v1731_v35 = vrot.slane %v1699_v32, %v4497_v9  ;;  %v2741_v32 = vld [vmem:[#allocation10 + $0x18] sm:$0xff]  }
 0x5c4   : > { %v1738_v37 = vsel %vm1596_vm7, %v1731_v35, %v1737_v36 }
 0x5c5   : > { %v1740_v39 = vsel %vm1599_vm8, %v1738_v37, 0.0 }
 0x5c6   : > { %1741 = vadd.xlane.f32.xlu1 %v1740_v39 }
 0x653   : > { %v1742_v40 = vpop.xlane.xlu1 %1741 }
 0x654   : > { %3266 = vrcp.f32 %v1742_v40  ;;  %v2734_v40 = vunpack.c.l.bf16 %v2741_v32 }
 0x65e   : > { %v3267_v41 = vpop.eup %3266 }
 0x65f   : > { %v1748_v42 = vrot.slane %v3267_v41, %v4460_v5  ;;  %v1752_v44 = vrot.slane %v3267_v41, %v4463_v8  ;;  %v1756_v47 = vrot.slane %v3267_v41, %v4470_v29  ;;  %v1760_v48 = vrot.slane %v3267_v41, %v1618_v33 }
 0x660   : > { %v1764_v51 = vrot.slane %v3267_v41, %v1622_v38  ;;  %v1768_v5 = vrot.slane %v3267_v41, %v1626_v45  ;;  %v1772_v29 = vrot.slane %v3267_v41, %v1630_v50  ;;  %v1776_v33 = vrot.slane %v3267_v41, %v1634_v53  ;;  %v3217_v38 = vld [vmem:[#allocation23 + $0x8] sm:$0xff]   ;;  %v3218_v45 = vld [vmem:[#allocation23 + $0x10] sm:$0xff]   ;;  %v3219_v50 = vld [vmem:[#allocation23 + $0x18] sm:$0xff]  }
 0x661   : > { %v1785_v43 = vmul.f32 %v3251_v57, %v1748_v42  ;;  %v1786_v46 = vmul.f32 %v3253_v59, %v1752_v44  ;;  %v1787_v9 = vmul.f32 %v3255_v63, %v1756_v47  ;;  %v1788_v49 = vmul.f32 %v3257_v6, %v1760_v48  ;;  %2859 = vmatpush3.bf16.msra.mxu1 %v3217_v38  ;;  %v3221_v53 = vld [vmem:[#allocation23 + $0x28] sm:$0xff]   ;;  %v3222_v57 = vld [vmem:[#allocation23 + $0x30] sm:$0xff]   ;;  %v3223_v59 = vld [vmem:[#allocation23 + $0x38] sm:$0xff]  }
 0x662   : > { %v1789_v52 = vmul.f32 %v3259_v10, %v1764_v51  ;;  %v1790_v8 = vmul.f32 %v3261_v11, %v1768_v5  ;;  %v1791_v54 = vmul.f32 %v3263_v12, %v1772_v29  ;;  %v1792_v56 = vmul.f32 %v3265_v13, %v1776_v33  ;;  %2860 = vmatprep.subr.bf16.mxu1 %v3879_v2 }
 0x663   : > { %1811 = vperm.xlu0 %3135, %v1785_v43   ;;  %v2722_v63 = vunpack.c.l.bf16 %v2721_v60 }
 0x665   : > { %2861 = vmatpush3.bf16.msra.mxu1 %v3218_v45 }
 0x666   : > { %2862 = vmatprep.subr.bf16.mxu1 %v3879_v2 }
 0x667   : > { %1816 = vperm.xlu0 %3135, %v1786_v46  }
 0x669   : > { %2863 = vmatpush3.bf16.msra.mxu1 %v3219_v50 }
 0x66a   : > { %2864 = vmatprep.subr.bf16.mxu1 %v3879_v2 }
 0x66b   : > { %1821 = vperm.xlu0 %3135, %v1787_v9  }
 0x66d   : > { %2865 = vmatpush3.bf16.msra.mxu1 %v3220_v4 }
 0x66e   : > { %2866 = vmatprep.subr.bf16.mxu1 %v3879_v2 }
 0x66f   : > { %1826 = vperm.xlu0 %3135, %v1788_v49  }
 0x671   : > { %2867 = vmatpush3.bf16.msra.mxu1 %v3221_v53 }
 0x672   : > { %2868 = vmatprep.subr.bf16.mxu1 %v3879_v2 }
 0x673   : > { %1831 = vperm.xlu0 %3135, %v1789_v52   ;;  %v2735_v52 = vunpack.c.h.bf16 %v2741_v32 }
 0x675   : > { %2869 = vmatpush3.bf16.msra.mxu1 %v3222_v57 }
 0x676   : > { %2870 = vmatprep.subr.bf16.mxu1 %v3879_v2 }
 0x677   : > { %1836 = vperm.xlu0 %3135, %v1790_v8  }
 0x679   : > { %2871 = vmatpush3.bf16.msra.mxu1 %v3223_v59 }
 0x67b   : > { %1841 = vperm.xlu0 %3135, %v1791_v54  }
 0x67f   : > { %1846 = vperm.xlu0 %3135, %v1792_v56  }
 0x6e2   : > { %v1812_v61 = vpop.permute.xlu0 %1811 }
 0x6e3   : > { %v1849_v10 = vmul.f32 %v2722_v63, %v1812_v61 }
 0x6e5   : > { %v1857_v15 = vrot.slane %v1849_v10, 4 }
 0x6e6   : > { %v1817_v1 = vpop.permute.xlu0 %1816 }
 0x6e7   : > { %v1850_v6 = vmul.f32 %v2723_v62, %v1817_v1  ;;  %v1858_v20 = vadd.f32 %v1857_v15, %v1849_v10 }
 0x6e9   : > { %v1863_v12 = vrot.slane %v1850_v6, 4  ;;  %v1859_v28 = vrot.slane %v1858_v20, 2 }
 0x6ea   : > { %v1822_v11 = vpop.permute.xlu0 %1821 }
 0x6eb   : > { %v1851_v13 = vmul.f32 %v2726_v7, %v1822_v11  ;;  %v1864_v18 = vadd.f32 %v1863_v12, %v1850_v6  ;;  %v1860_v41 = vadd.f32 %v1859_v28, %v1858_v20 }
 0x6ed   : > { %v1869_v16 = vrot.slane %v1851_v13, 4  ;;  %v1865_v25 = vrot.slane %v1864_v18, 2  ;;  %v1861_v5 = vrot.slane %v1860_v41, 1 }
 0x6ee   : > { %v1827_v17 = vpop.permute.xlu0 %1826 }
 0x6ef   : > { %v1852_v19 = vmul.f32 %v2727_v14, %v1827_v17  ;;  %v1870_v21 = vadd.f32 %v1869_v16, %v1851_v13  ;;  %v1866_v37 = vadd.f32 %v1865_v25, %v1864_v18  ;;  %v1862_v57 = vadd.f32 %v1861_v5, %v1860_v41 }
 0x6f1   : > { %v1875_v23 = vrot.slane %v1852_v19, 4  ;;  %v1871_v30 = vrot.slane %v1870_v21, 2  ;;  %v1867_v48 = vrot.slane %v1866_v37, 1  ;;  %v1921_v12 = vpack.c.bf16 %v1862_v57, %v1862_v57 }
 0x6f2   : > { %v1832_v24 = vpop.permute.xlu0 %1831 }
 0x6f3   : > { %v1876_v26 = vadd.f32 %v1875_v23, %v1852_v19  ;;  %v1853_v31 = vmul.f32 %v2730_v22, %v1832_v24  ;;  %v1872_v42 = vadd.f32 %v1871_v30, %v1870_v21  ;;  %v1868_v45 = vadd.f32 %v1867_v48, %v1866_v37 }
 0x6f4   : > { %v1953_v21 = vunpack.c.l.b16 %v1921_v12 }
 0x6f5   : > { %v1877_v34 = vrot.slane %v1876_v26, 2  ;;  %v1881_v35 = vrot.slane %v1853_v31, 4  ;;  %v1873_v8 = vrot.slane %v1872_v42, 1  ;;  %v1922_v1 = vpack.c.bf16 %v1868_v45, %v1868_v45 }
 0x6f6   : > { %v1837_v36 = vpop.permute.xlu0 %1836 }
 0x6f7   : > { %v1854_v39 = vmul.f32 %v2731_v27, %v1837_v36  ;;  %v1882_v43 = vadd.f32 %v1881_v35, %v1853_v31  ;;  %v1878_v44 = vadd.f32 %v1877_v34, %v1876_v26  ;;  %v1874_v59 = vadd.f32 %v1873_v8, %v1872_v42 }
 0x6f8   : > { %v1954_v3 = vunpack.c.l.b16 %v1922_v1  ;;  %v3883_v42 = vmov -1e+30  }
 0x6f9   : > { %v1887_v46 = vrot.slane %v1854_v39, 4  ;;  %v1883_v47 = vrot.slane %v1882_v43, 2  ;;  %v1879_v54 = vrot.slane %v1878_v44, 1  ;;  %v1923_v11 = vpack.c.bf16 %v1874_v59, %v1874_v59  ;;  %2158 = vst.msk [vmem:[#allocation3] sm:$0xff] %vm2157_vm9, %v3883_v42 }
 0x6fa   : > { %v1842_v9 = vpop.permute.xlu0 %1841  ;;  %v1961_v26 = vsel %vm1584_vm1, %v1954_v3, %v1953_v21 }
 0x6fb   : > { %v1888_v49 = vadd.f32 %v1887_v46, %v1854_v39  ;;  %v1855_v51 = vmul.f32 %v2734_v40, %v1842_v9  ;;  %v1884_v29 = vadd.f32 %v1883_v47, %v1882_v43  ;;  %v1880_v60 = vadd.f32 %v1879_v54, %v1878_v44  ;;  %v2684_v44 = vld [vmem:[#allocation25] ss:$0 sm:$0xff] }
 0x6fc   : > { %v1955_v20 = vunpack.c.l.b16 %v1923_v11 }
 0x6fd   : > { %v1889_v33 = vrot.slane %v1888_v49, 2  ;;  %v1893_v55 = vrot.slane %v1855_v51, 4  ;;  %v1885_v56 = vrot.slane %v1884_v29, 1  ;;  %v1924_v13 = vpack.c.bf16 %v1880_v60, %v1880_v60 }
 0x6fe   : > { %v1847_v38 = vpop.permute.xlu0 %1846  ;;  %v1962_v30 = vsel %vm1586_vm2, %v1955_v20, %v1961_v26 }
 0x6ff   : > { %v1890_v50 = vadd.f32 %v1889_v33, %v1888_v49  ;;  %v1894_v4 = vadd.f32 %v1893_v55, %v1855_v51  ;;  %v1856_v53 = vmul.f32 %v2735_v52, %v1847_v38  ;;  %v1886_v0 = vadd.f32 %v1885_v56, %v1884_v29 }
 0x700   : > { %v1956_v22 = vunpack.c.l.b16 %v1924_v13 }
 0x701   : > { %v1891_v61 = vrot.slane %v1890_v50, 1  ;;  %v1895_v62 = vrot.slane %v1894_v4, 2  ;;  %v1899_v63 = vrot.slane %v1856_v53, 4  ;;  %v1925_v16 = vpack.c.bf16 %v1886_v0, %v1886_v0 }
 0x702   : > { %v1963_v32 = vsel %vm1588_vm3, %v1956_v22, %v1962_v30 }
 0x703   : > { %v1892_v6 = vadd.f32 %v1891_v61, %v1890_v50  ;;  %v1896_v7 = vadd.f32 %v1895_v62, %v1894_v4  ;;  %v1900_v10 = vadd.f32 %v1899_v63, %v1856_v53  ;;  %v1957_v25 = vunpack.c.l.b16 %v1925_v16 }
 0x705   : > { %v1897_v14 = vrot.slane %v1896_v7, 1  ;;  %v1901_v15 = vrot.slane %v1900_v10, 2  ;;  %v1926_v17 = vpack.c.bf16 %v1892_v6, %v1892_v6  ;;  %v1964_v35 = vsel %vm1590_vm4, %v1957_v25, %v1963_v32 }
 0x707   : > { %v1898_v18 = vadd.f32 %v1897_v14, %v1896_v7  ;;  %v1902_v19 = vadd.f32 %v1901_v15, %v1900_v10  ;;  %v1958_v27 = vunpack.c.l.b16 %v1926_v17 }
 0x709   : > { %v1927_v23 = vpack.c.bf16 %v1898_v18, %v1898_v18  ;;  %v1903_v24 = vrot.slane %v1902_v19, 1  ;;  %v1965_v36 = vsel %vm1592_vm5, %v1958_v27, %v1964_v35 }
 0x70b   : > { %v1904_v28 = vadd.f32 %v1903_v24, %v1902_v19  ;;  %v1959_v31 = vunpack.c.l.b16 %v1927_v23 }
 0x70d   : > { %v1928_v34 = vpack.c.bf16 %v1904_v28, %v1904_v28  ;;  %v1966_v39 = vsel %vm1594_vm6, %v1959_v31, %v1965_v36 }
 0x70f   : > { %v1960_v37 = vunpack.c.l.b16 %v1928_v34 }
 0x711   : > { %v1967_v40 = vsel %vm1596_vm7, %v1960_v37, %v1966_v39 }
 0x712   : > { %v1968_v41 = vpack.c.b16 %v1967_v40, %v1967_v40 }
 0x714   : > { %2873 = vmatmul.mubr.bf16.vlgmr.msra.gmra.mrb[8].mxu1 %v1968_v41 }
 0x7e7   : > { %v2052_v43 = vpop.f32.mrb[8].mxu1 }
 0x7e8   : > { %v2141_v46 = vadd.f32 %v4493_v58, %v2052_v43  ;;  %v2874_v47 = vpop.f32.mrb[9].mxu1 }
 0x7e9   : > { %v2055_v9 = vpop.f32.mrb[10].mxu1 }
 0x7ea   : > { %v2153_v48 = vadd.f32 %v2684_v44, %v2141_v46  ;;  %v2875_v49 = vpop.f32.mrb[11].mxu1 }
 0x7ec   : > { %3268 = vtanh.f32 %v2153_v48 }
 0x7f6   : > { %v3269_v51 = vpop.eup %3268 }
 0x7f7   : > { %v2155_v52 = vpack.c.bf16 %v3269_v51, %v3269_v51 }
 0x7f9   : > { %2156 = vst [vmem:[#allocation2] sm:$0xf] %v2155_v52 }
 0x7fa PF: > { %v3271_v5 = vld [vmem:[%s4403_s18] sm:$0xff]   ;;  %v3884_v2 = vmov 0.0   ;;  %v3272_v58 = vld [vmem:[%s4403_s18 + $0x8] sm:$0xff]   ;;  %vm3885_vm10 = vmmov 0   ;;  %v3273_v8 = vld [vmem:[%s4403_s18 + $0x10] sm:$0xff]   ;;  %v3886_v59 = vmov 0  }
 0x7fb   : > { %2896 = vmatprep.subr.bf16.mxu0 %v3884_v2  ;;  %2912 = vmatprep.mubr.msk.bf16.mxu0 %vm3885_vm10, %v3884_v2  ;;  %v3274_v29 = vld [vmem:[%s4403_s18 + $0x18] sm:$0xff]   ;;  %v3275_v54 = vld [vmem:[%s4403_s18 + $0x20] sm:$0xff]   ;;  %v3276_v33 = vld [vmem:[%s4403_s18 + $0x28] sm:$0xff]   ;;  %vm2287_vm11 = vcmask 7168   ;;  %s4802_s20 = sld [smem:[#allocation46_spill]] }
 0x7fc   : > { %2897 = vmatpush3.bf16.msra.mxu0 %v3271_v5  ;;  %v3277_v55 = vld [vmem:[%s4403_s18 + $0x30] sm:$0xff]   ;;  %v3278_v56 = vld [vmem:[%s4403_s18 + $0x38] sm:$0xff]   ;;  %3270 = vset.pattern.permute.xlu0 %v3886_v59 }
 0x7fd   : > { %2898 = vmatprep.subr.bf16.mxu0 %v3884_v2  ;;  %v2267_v60 = vld [vmem:[#allocation3] sm:$0xff]  ;;  %v2271_v12 = vld [vmem:[#allocation4] sm:$0xff] }
 0x800   : > { %2899 = vmatpush3.bf16.msra.mxu0 %v3272_v58  ;;  %v2160_v38 = vld [vmem:[#allocation2] sm:$0xf] }
 0x801   : > { %2900 = vmatprep.subr.bf16.mxu0 %v3884_v2  ;;  %p2693_p11 = scmp.ne.s32.totalorder %s4802_s20, 2 }
 0x804   : > { %2901 = vmatpush3.bf16.msra.mxu0 %v3273_v8 }
 0x805   : > { %2902 = vmatprep.subr.bf16.mxu0 %v3884_v2 }
 0x808   : > { %2903 = vmatpush3.bf16.msra.mxu0 %v3274_v29 }
 0x809   : > { %2904 = vmatprep.subr.bf16.mxu0 %v3884_v2 }
 0x80c   : > { %2905 = vmatpush3.bf16.msra.mxu0 %v3275_v54 }
 0x80d   : > { %2906 = vmatprep.subr.bf16.mxu0 %v3884_v2 }
 0x810   : > { %2907 = vmatpush3.bf16.msra.mxu0 %v3276_v33 }
 0x811   : > { %2908 = vmatprep.subr.bf16.mxu0 %v3884_v2 }
 0x814   : > { %2909 = vmatpush3.bf16.msra.mxu0 %v3277_v55 }
 0x815   : > { %2910 = vmatprep.subr.bf16.mxu0 %v3884_v2 }
 0x818   : > { %2911 = vmatpush3.bf16.msra.mxu0 %v3278_v56 }
 0x81b   : > { %2913 = vmatmul.mubr.bf16.vlgmr.msra.gmra.mrb[0].mxu0 %v2160_v38 }
 0x8ee   : > { %v2259_v45 = vpop.f32.mrb[0].mxu0 }
 0x8ef   : > { %v2265_v50 = vpack.c.bf16 %v2259_v45, %v2259_v45  ;;  %2268 = vmax.xlane.f32.xlu0 %v2259_v45  ;;  %v2914_v4 = vpop.f32.mrb[1].mxu0 }
 0x8f0   : > { %v2262_v53 = vpop.f32.mrb[2].mxu0 }
 0x8f1   : > { %2266 = vst [vmem:[%s4410_s1] sm:$0xf] %v2265_v50  ;;  %v2915_v57 = vpop.f32.mrb[3].mxu0 }
 0x97c   : > { %v2269_v61 = vpop.xlane.xlu0 %2268 }
 0x97d   : > { %v2270_v62 = vmax.f32 %v2267_v60, %v2269_v61 }
 0x97f   : > { %v2272_v63 = vsub.f32 %v2267_v60, %v2270_v62  ;;  %2289 = vst.msk [vmem:[#allocation3] sm:$0xff] %vm2287_vm11, %v2270_v62  ;;  %2278 = vperm.xlu0 %3270, %v2270_v62  }
 0x981   : > { %v2273_v10 = vmul.f32 1.442695, %v2272_v63 }
 0x986   : > { %v2294_v16 = vld [vmem:[#allocation3] sm:$0xff] (!%p2693_p11) }
 0x987   : > { %2295 = vst.msk [vmem:[#allocation31] sm:$0xff] (!%p2693_p11), %vm2287_vm11, %v2294_v16 }
 0x9fe   : > { %v2279_v0 = vpop.permute.xlu0 %2278 }
 0x9ff   : > { %v2281_v1 = vsub.f32 %v2259_v45, %v2279_v0 }
 0xa01   : > { %v2282_v6 = vmul.f32 1.442695, %v2281_v1 }
 0xa03   : > { %3279 = vpow2.f32 %v2282_v6 }
 0xa04   : > { %3281 = vpow2.f32 %v2273_v10 }
 0xa0d   : > { %v3280_v7 = vpop.eup %3279 }
 0xa0e   : > { %2284 = vadd.xlane.f32.xlu1 %v3280_v7  ;;  %v3282_v11 = vpop.eup %3281 }
 0xa0f   : > { %v2275_v13 = vmul.f32 %v3282_v11, %v2271_v12 }
 0xa98   : > { %2293 = sbr.rel (%p2693_p11) target bundleno = 2738 (0xab2), region = 140 }
 0xa9b   : > { %v2285_v14 = vpop.xlane.xlu1 %2284 }
 0xa9c   : > { %v2286_v15 = vadd.f32 %v2285_v14, %v2275_v13 }
 0xa9e   : > { %2288 = vst.msk [vmem:[#allocation4] sm:$0xff] %vm2287_vm11, %v2286_v15 }
 0xaa5   : > { %v2296_v3 = vld [vmem:[#allocation4] sm:$0xff] }
 0xaa6   : > { %3283 = vrcp.f32 %v2296_v3 }
 0xab0   : > { %v3284_v17 = vpop.eup %3283 }
 0xab1   : > { %2298 = vst.msk [vmem:[#allocation32] sm:$0xff] %vm2287_vm11, %v3284_v17 }
 0xab2 PF: > { %s3887_s16 = smov [#allocation29]   ;;  %s4803_s30 = sld [smem:[#allocation46_spill]] }
 0xab3   : > { %s2324_s23 = sshll.u32 %s3887_s16, 4  ;;  %s4804_s4 = sld [smem:[#allocation56_spill]]  ;;  %s2325_s23 = int_to_ptr.vmem [resolvable:$true] %s2324_s23 }
 0xab4   : > { %s3679_s28 = scalar_lea.vmem %s2325_s23, 128  ;;  %p3686_p13 = scmp.lt.s32.totalorder %s2325_s23, %s2325_s23 }
 0xab5   : > { %p3680_p6 = scmp.ne.s32.totalorder %s2325_s23, %s3679_s28  ;;  %p3687_p5 = scmp.lt.s32.totalorder %s3679_s28, %s3679_s28 }
 0xab7   : > { %p3688_p7 = por %p3687_p5, %p3686_p13 }
 0xab8   : > { %s2695_s3 = sshll.u32 %s4803_s30, 6  ;;  %p4805_p0 = scmp.eq.s32.totalorder %s4803_s30, 2 }
 0xab9   : > { %s4596_s2 = scalar_lea.hbm %s4804_s4, %s2695_s3 }
 0xaba   : > { %p3681_p12 = pnand %p3680_p6, %p4805_p0 }
 0xabc   : > { %p3682_p2 = pneg %p3681_p12 }
 0xabe   : > { %p3689_p3 = pnand %p3688_p7, %p3682_p2 }
 0xac0   : > { %3692 = shalt.err (!%p3689_p3)
}
 0xac1   : > { %s4806_s14 = sld [smem:[#allocation57_spill]]  ;;  %p4807_p10 = pmov %p4805_p0 }
 0xac7   : > { %s3693_s20 = scalar_lea.hbm %s4806_s14, 128 }
 0xac8   : > { %p3694_p4 = scmp.ne.s32.totalorder %s4806_s14, %s3693_s20  ;;  %p3699_p9 = scmp.lt.u32.totalorder %s3693_s20, %s4806_s14 }
 0xaca   : > { %p3695_p1 = pnand %p3694_p4, %p4807_p10 }
 0xacc   : > { %p3696_p8 = pneg %p3695_p1 }
 0xace   : > { %p3701_p11 = pnand %p3699_p9, %p3696_p8 }
 0xad0   : > { %3704 = shalt.err (!%p3701_p11)
}
 0xad1   : > { %p4808_p6 = pmov %p4805_p0  ;;  %s2313_s6 = sshll.u32 %s4410_s1, 4  ;;  %s4617_s6 = int_to_ptr.vmem [resolvable:$true] %s2313_s6 }
 0xad2   : > { %s3888_s0 = smov [#allocation31]   ;;  %s2300_s20 = scalar_lea.sflag [#allocation7], %s4399_s21 }
 0xad3   : > { %2980 = dma.vmem_to_hbm [thread:$0]  (%p4808_p6), %s2325_s23, 128, %s4806_s14, [#allocation30]  }
 0xad4   : > { %s4619_s18 = sshll.u32 %s3888_s0, 4  ;;  %s3705_s16 = scalar_lea.vmem %s4617_s6, 64  ;;  %s2336_s18 = int_to_ptr.vmem [resolvable:$true] %s4619_s18 }
 0xad5   : > { %p3706_p0 = scmp.ne.s32.totalorder %s4617_s6, %s3705_s16  ;;  %p4809_p12 = scmp.ne.s32.totalorder %s4780_s5, 0 }
 0xad6   : > { %s3889_s3 = smov [#allocation28]  }
 0xad7   : > { %p3707_p2 = pnand %p3706_p0, %p4809_p12  ;;  %s3709_s13 = sshll.u32 %s3889_s3, 4  ;;  %s3710_s13 = int_to_ptr.vmem [resolvable:$false] %s3709_s13 }
 0xad8   : > { %s3711_s19 = scalar_lea.vmem %s3710_s13, 128  ;;  %p3712_p5 = scmp.lt.s32.totalorder %s4617_s6, %s3710_s13 }
 0xad9   : > { %p3708_p13 = pneg %p3707_p2  ;;  %p3713_p7 = scmp.lt.s32.totalorder %s3711_s19, %s3705_s16 }
 0xadb   : > { %p3714_p3 = por %p3713_p7, %p3712_p5 }
 0xadd   : > { %p3715_p4 = pnand %p3714_p3, %p3708_p13 }
 0xadf   : > { %3718 = shalt.err (!%p3715_p4)
}
 0xae0   : > { %s3719_s21 = scalar_lea.hbm %s4596_s2, 64  ;;  %s3723_s28 = scalar_lea.hbm %s4804_s4, 192 }
 0xae1   : > { %p3720_p10 = scmp.ne.s32.totalorder %s4596_s2, %s3719_s21  ;;  %p3724_p9 = scmp.lt.u32.totalorder %s4596_s2, %s4804_s4 }
 0xae2   : > { %p3725_p11 = scmp.lt.u32.totalorder %s3723_s28, %s3719_s21  ;;  %p3727_p0 = scmp.lt.u32.totalorder %s3719_s21, %s4596_s2 }
 0xae3   : > { %p3721_p1 = pnand %p3720_p10, %p4809_p12 }
 0xae4   : > { %p3726_p6 = por %p3725_p11, %p3724_p9 }
 0xae5   : > { %p3722_p8 = pneg %p3721_p1 }
 0xae6   : > { %p3728_p2 = por %p3727_p0, %p3726_p6 }
 0xae8   : > { %p3729_p13 = pnand %p3728_p2, %p3722_p8 }
 0xaea   : > { %3732 = shalt.err (!%p3729_p13)
}
 0xaeb   : > { %2978 = dma.vmem_to_hbm [thread:$0]  (%p4809_p12), %s4617_s6, 64, %s4596_s2, %s2300_s20  }
 0xaec   : > { %s3733_s16 = scalar_lea.vmem %s2336_s18, 128  ;;  %p4810_p7 = scmp.eq.s32.totalorder %s4803_s30, 2 }
 0xaed   : > { %p3734_p5 = scmp.ne.s32.totalorder %s2336_s18, %s3733_s16  ;;  %p3740_p10 = scmp.lt.s32.totalorder %s2336_s18, %s2336_s18 }
 0xaee   : > { %p3741_p1 = scmp.lt.s32.totalorder %s3733_s16, %s3733_s16 }
 0xaef   : > { %p3735_p3 = pnand %p3734_p5, %p4810_p7 }
 0xaf0   : > { %p3742_p9 = por %p3741_p1, %p3740_p10 }
 0xaf1   : > { %p3736_p4 = pneg %p3735_p3 }
 0xaf3   : > { %p3743_p11 = pnand %p3742_p9, %p3736_p4 }
 0xaf5   : > { %3746 = shalt.err (!%p3743_p11)
}
 0xaf6   : > { %s4811_s21 = sld [smem:[#allocation58_spill]]  ;;  %p4812_p8 = pmov %p4810_p7 }
 0xafc   : > { %s3747_s5 = scalar_lea.hbm %s4811_s21, 128 }
 0xafd   : > { %p3748_p12 = scmp.ne.s32.totalorder %s4811_s21, %s3747_s5  ;;  %p3753_p2 = scmp.lt.u32.totalorder %s3747_s5, %s4811_s21 }
 0xaff   : > { %p3749_p6 = pnand %p3748_p12, %p4812_p8 }
 0xb01   : > { %p3750_p0 = pneg %p3749_p6 }
 0xb03   : > { %p3755_p13 = pnand %p3753_p2, %p3750_p0 }
 0xb05   : > { %3758 = shalt.err (!%p3755_p13)
}
 0xb06   : > { %p4813_p5 = pmov %p4810_p7  ;;  %s3890_s0 = smov [#allocation32]  }
 0xb07   : > { %s2346_s3 = sshll.u32 %s3890_s0, 4  ;;  %s2347_s3 = int_to_ptr.vmem [resolvable:$true] %s2346_s3 }
 0xb08   : > { %2982 = dma.vmem_to_hbm [thread:$0]  (%p4813_p5), %s2336_s18, 128, %s4811_s21, [#allocation30]  }
 0xb09   : > { %s3759_s16 = scalar_lea.vmem %s2347_s3, 128  ;;  %p4814_p3 = pmov %p4813_p5 }
 0xb0a   : > { %p3760_p7 = scmp.ne.s32.totalorder %s2347_s3, %s3759_s16  ;;  %p3766_p1 = scmp.lt.s32.totalorder %s2347_s3, %s2347_s3 }
 0xb0b   : > { %p3767_p9 = scmp.lt.s32.totalorder %s3759_s16, %s3759_s16 }
 0xb0c   : > { %p3761_p4 = pnand %p3760_p7, %p4814_p3 }
 0xb0d   : > { %p3768_p11 = por %p3767_p9, %p3766_p1 }
 0xb0e   : > { %p3762_p10 = pneg %p3761_p4 }
 0xb10   : > { %p3769_p12 = pnand %p3768_p11, %p3762_p10 }
 0xb12   : > { %3772 = shalt.err (!%p3769_p12)
}
 0xb13   : > { %s4815_s5 = sld [smem:[#allocation59_spill]]  ;;  %p4816_p6 = pmov %p4814_p3 }
 0xb19   : > { %s3773_s1 = scalar_lea.hbm %s4815_s5, 128 }
 0xb1a   : > { %p3774_p8 = scmp.ne.s32.totalorder %s4815_s5, %s3773_s1  ;;  %p3779_p13 = scmp.lt.u32.totalorder %s3773_s1, %s4815_s5 }
 0xb1c   : > { %p3775_p0 = pnand %p3774_p8, %p4816_p6 }
 0xb1e   : > { %p3776_p2 = pneg %p3775_p0 }
 0xb20   : > { %p3781_p5 = pnand %p3779_p13, %p3776_p2 }
 0xb22   : > { %3784 = shalt.err (!%p3781_p5)
}
 0xb23   : > { %p4817_p7 = pmov %p4814_p3 }
 0xb25   : > { %2984 = dma.vmem_to_hbm [thread:$0]  (%p4817_p7), %s2347_s3, 128, %s4815_s5, [#allocation33]  }
 0xb26   : > { %3834 = dma.done.wait (%p4814_p3), [#allocation30], 256   ;;  %p4818_p4 = pmov %p4814_p3 }
 0xb27   : > { %p4819_p10 = pmov %p4814_p3 }
 0xb28   : > { %3836 = vsyncadd (%p4818_p4), [#allocation30], 4294967040 }
 0xb29   : > { %3838 = dma.done.wait (%p4819_p10), [#allocation33], 128   ;;  %p4820_p1 = pmov %p4814_p3 }
 0xb2b   : > { %3840 = vsyncadd (%p4820_p1), [#allocation33], 4294967168 }
 0xb2c PF: > { %s4821_s0 = sld [smem:[#allocation45_spill]]  ;;  %p3073_p9 = scmp.ge.s32.totalorder %s3859_s27, 2 }
 0xb2d   : > { %p4822_p11 = scmp.ne.s32.totalorder %s4781_s22, 0 }
 0xb2f   : > { %p3037_p12 = pnand %p3073_p9, %p4822_p11 }
 0xb32   : > { %s2370_s16 = sand.u32 1, %s4821_s0  }
 0xb33   : > { %s2371_s3 = scalar_lea.sflag [#allocation7], %s2370_s16 }
 0xb34   : > { %3842 = dma.done.wait (!%p3037_p12), %s2371_s3, 64  }
 0xb35   : > { %3844 = vsyncadd (!%p3037_p12), %s2371_s3, 4294967232  ;;  %s4823_s13 = smov %s4305_s24  ;;  %p40_p8 = scmp.ge.s32.totalorder %s4293_s29, 5  }
 0xb36   : > { %s4824_s24 = smov %s3851_s25  ;;  %s4825_s25 = smov %s3855_s26 }
 0xb37   : > { %s4826_s26 = smov %s4823_s13  ;;  %s4827_s27 = smov %s4293_s29 }
 0xb38   :  { %42 = sbr.rel (!%p40_p8) target bundleno = 27 (0x1b), region = 206 }
 0xb3f   :  { %2376 = vsyncpa [#allocation6], 1 }
 0xb40   :  { %2378 = vsyncpa [#allocation6 + $0x1], 1 }
 0xb41   :  { %2379 = vsyncpa [#allocation9], 1 }
 0xb42   :  { %2380 = vsyncpa [#allocation12], 1 }
 0xb43   :  { %2381 = vsyncpa [#allocation15], 1 }
 0xb44   :  { %2382 = vsyncpa [#allocation18], 1 }
 0xb45   :  { %2383 = vsyncpa [#allocation21], 1 }
 0xb46   :  { %2384 = vsyncpa [#allocation24], 1 }
 0xb47   :  { %2385 = vsyncpa [#allocation27], 1 }
 0xb48   :  { %2387 = vsyncpa [#allocation27 + $0x1], 1 }
 0xb49   :  { %2388 = vsyncpa [#allocation7], 1 }
 0xb4a   :  { %2390 = vsyncpa [#allocation7 + $0x1], 1 }
 0xb4b   :  { %2391 = vsyncpa [#allocation30], 1 }
 0xb4c   :  { %2392 = vsyncpa [#allocation33], 1 }

</bundles_post_ra>
